<compile_context>
chip_gen: v7x
topology: tpu7x:2x2x1
jax: 0.10.0
libtpu: 0.0.40
codegen_flags: <defaults>
</compile_context>

<pallas_src>
import jax
import jax.numpy as jnp
from jax.experimental import pallas as pl
from jax.experimental.pallas import tpu as pltpu

K = 5            # conv kernel size (f in the PyTorch module)
C1, C2 = 6, 16   # conv1 / conv2 output channels


def _round_up(x, m):
    return (x + m - 1) // m * m


def _cnn_kernel(x_ref, w1t_ref, b1t_ref, w2t_ref, b2t_ref,
                wf1_ref, bf1_ref, wf2_ref, bf2_ref, wf3_ref, bf3_ref,
                out_ref):
    md = w1t_ref.dtype                  # MXU operand dtype (f32; bf16 on v6e/v7x)
    w1p = w1t_ref.shape[1]              # padded L1*C1
    w2p = w2t_ref.shape[1]              # padded L2*C2

    x = x_ref[...].astype(md)           # (TB, D_in)

    # ---- conv1: Toeplitz matmul; bias + ReLU in f32 on the VPU -------------
    y1 = jnp.dot(x, w1t_ref[...], preferred_element_type=jnp.float32)
    y1 = jnp.maximum(y1 + b1t_ref[...], 0.0)                  # (TB, W1P)
    # MaxPool1d(2): neighbour max via lane roll by one spatial step (C1 lanes);
    # "keep even positions" is folded into zero rows of w2t (and the roll's
    # lane-wrap only touches rows with zero weight, matching floor pooling).
    z1 = jnp.maximum(y1, pltpu.roll(y1, shift=w1p - C1, axis=1))

    # ---- conv2: block-Toeplitz matmul on the flat pooled activation --------
    y2 = jnp.dot(z1.astype(md), w2t_ref[...], preferred_element_type=jnp.float32)
    y2 = jnp.maximum(y2 + b2t_ref[...], 0.0)                  # (TB, W2P)
    z2 = jnp.maximum(y2, pltpu.roll(y2, shift=w2p - C2, axis=1))

    # ---- FC head (pool2 selection + PyTorch channel-major flatten folded
    #      into the zero rows / row permutation of wf1) ----------------------
    h1 = jnp.maximum(
        jnp.dot(z2.astype(md), wf1_ref[...], preferred_element_type=jnp.float32)
        + bf1_ref[...], 0.0)
    h2 = jnp.maximum(
        jnp.dot(h1.astype(md), wf2_ref[...], preferred_element_type=jnp.float32)
        + bf2_ref[...], 0.0)
    out = (jnp.dot(h2.astype(md), wf3_ref[...], preferred_element_type=jnp.float32)
           + bf3_ref[...])                                    # (TB, OUT_PAD)
    out_ref[...] = out.astype(out_ref.dtype)
    # TODO(synk): optional bf16 output store if HBM-writeback bound at huge N.


def cnn_forward(x, params, *, tb=512, mxu_dtype=None):
    """x: (N, 1, D_in) float32 (PyTorch NCW layout)."""
    N, c_in, D_in = x.shape
    assert c_in == 1
    L1 = D_in - K + 1
    L1p = L1 // 2
    L2 = L1p - K + 1
    l_out = L2 // 2
    assert L2 >= 1 and l_out >= 1, "D_in too small for this CNN"
    H1 = params["wf1"].shape[1]
    H2 = params["wf2"].shape[1]
    D_out = params["wf3"].shape[1]

    W1, W2 = L1 * C1, L2 * C2
    W1P, W2P = _round_up(W1, 128), _round_up(W2, 128)
    H1P, H2P = _round_up(H1, 128), _round_up(H2, 128)
    out_pad = _round_up(D_out, 128)

    # Batch tiling: multiple of 8, large enough to amortize the ~0.35us/step
    # grid overhead, and >= 2 steps when possible so both v7x TCs get work.
    NP8 = _round_up(max(N, 1), 8)
    tb = max(8, min(_round_up(tb, 8), NP8))
    if NP8 // tb < 2 and NP8 >= 16:
        tb = _round_up((NP8 + 1) // 2, 8)
    NP = _round_up(NP8, tb)

    x2d = x.reshape(N, D_in).astype(jnp.float32)
    if NP != N:
        x2d = jnp.pad(x2d, ((0, NP - N), (0, 0)))

    f32 = jnp.float32
    wd = f32 if mxu_dtype is None else mxu_dtype

    # ---- conv1: dense Toeplitz expansion (D_in, W1P) -----------------------
    # TODO(synk): for large D_in on v7x (64 MiB VMEM) tile w1t along D_in over
    # an extra grid axis instead of keeping the dense matrix fully resident.
    w1m = params["w1"][:, 0, :].T.astype(f32)                 # (K, C1)
    d_idx = jnp.arange(D_in)[:, None]
    l_idx = jnp.arange(L1)[None, :]
    k_rel = d_idx - l_idx
    valid = (k_rel >= 0) & (k_rel < K)
    w1t_core = jnp.where(valid[:, :, None],
                         w1m[jnp.where(valid, k_rel, 0)], 0.0)  # (D_in, L1, C1)
    w1t = jnp.zeros((D_in, W1P), f32).at[:, :W1].set(w1t_core.reshape(D_in, W1))
    b1t = jnp.zeros((1, W1P), f32).at[0, :W1].set(jnp.tile(params["b1"], L1))

    # ---- conv2: block-Toeplitz weight over the pooled flat activation ------
    # row = (2*(j+k))*C1 + ci ; col = j*C2 + co ; value = w2[co, ci, k].
    # Odd / unused spatial rows stay zero -> implements pool1's even-position
    # selection for free.
    jj = jnp.arange(L2)[:, None, None, None]
    kk = jnp.arange(K)[None, :, None, None]
    ci = jnp.arange(C1)[None, None, :, None]
    co = jnp.arange(C2)[None, None, None, :]
    rows = (2 * (jj + kk)) * C1 + ci
    cols = jj * C2 + co
    vals = jnp.transpose(params["w2"], (2, 1, 0))[None].astype(f32)  # (1,K,C1,C2)
    rows, cols, vals = jnp.broadcast_arrays(rows, cols, vals)
    w2t = jnp.zeros((W1P, W2P), f32).at[
        rows.reshape(-1), cols.reshape(-1)].set(vals.reshape(-1))
    b2t = jnp.zeros((1, W2P), f32).at[0, :W2].set(jnp.tile(params["b2"], L2))

    # ---- fc1: rows scattered to even post-conv2 positions (pool2 + PyTorch
    #           channel-major flatten folded into the row layout) ------------
    wf1_cols = jnp.zeros((C2 * l_out, H1P), f32).at[:, :H1].set(params["wf1"])
    pp = jnp.arange(l_out)[:, None]
    cc = jnp.arange(C2)[None, :]
    dst = ((2 * pp) * C2 + cc).reshape(-1)
    src = (cc * l_out + pp).reshape(-1)
    wf1e = jnp.zeros((W2P, H1P), f32).at[dst].set(wf1_cols[src])
    bf1 = jnp.zeros((1, H1P), f32).at[0, :H1].set(params["bf1"])

    # ---- fc2 / fc3 padded to full 128-lane widths ---------------------------
    wf2p = jnp.zeros((H1P, H2P), f32).at[:H1, :H2].set(params["wf2"])
    bf2 = jnp.zeros((1, H2P), f32).at[0, :H2].set(params["bf2"])
    wf3p = jnp.zeros((H2P, out_pad), f32).at[:H2, :D_out].set(params["wf3"])
    bf3 = jnp.zeros((1, out_pad), f32).at[0, :D_out].set(params["bf3"])

    args = (x2d, w1t.astype(wd), b1t, w2t.astype(wd), b2t,
            wf1e.astype(wd), bf1, wf2p.astype(wd), bf2, wf3p.astype(wd), bf3)

    def resident(a):
        nd = a.ndim
        # same block index every grid step -> weight stays resident in VMEM
        return pl.BlockSpec(a.shape, lambda i: (0,) * nd)

    in_specs = [pl.BlockSpec((tb, D_in), lambda i: (i, 0))]
    in_specs += [resident(a) for a in args[1:]]
    out_specs = pl.BlockSpec((tb, out_pad), lambda i: (i, 0))

    # Scoped-VMEM budget: resident (double-buffered) weights + in/out blocks +
    # headroom for f32 intermediates.  Never below 32 MiB (compiler defaults),
    # never above 48 MiB (fits v7x's 64 MiB physical VMEM).
    weight_bytes = sum(int(a.size) * a.dtype.itemsize for a in args[1:])
    est = (2 * weight_bytes
           + 2 * tb * (D_in + out_pad) * 4
           + 8 * tb * max(W1P, W2P, H1P, out_pad) * 4
           + (2 << 20))
    vmem_limit = int(min(48 << 20, max(32 << 20, est)))

    out = pl.pallas_call(
        _cnn_kernel,
        out_shape=jax.ShapeDtypeStruct((NP, out_pad), jnp.float32),
        grid=(NP // tb,),
        in_specs=in_specs,
        out_specs=out_specs,
        compiler_params=pltpu.CompilerParams(
            dimension_semantics=("parallel",),
            vmem_limit_bytes=vmem_limit),
    )(*args)
    return out[:N, :D_out]


def init_params(key, D_in, D_out):
    """Deterministic init matching the PyTorch module's parameter shapes.
    FC weights are stored pre-transposed as (in, out)."""
    keys = jax.random.split(key, 10)

    def u(k, shape, fan_in):
        bound = 1.0 / jnp.sqrt(jnp.float32(fan_in))
        return jax.random.uniform(k, shape, jnp.float32, -bound, bound)

    l1 = D_in - K + 1
    l2 = l1 // 2 - K + 1
    l_out = l2 // 2
    fc1_in = 16 * l_out
    return dict(
        w1=u(keys[0], (6, 1, K), 1 * K),  b1=u(keys[1], (6,), 1 * K),
        w2=u(keys[2], (16, 6, K), 6 * K), b2=u(keys[3], (16,), 6 * K),
        wf1=u(keys[4], (fc1_in, 128), fc1_in), bf1=u(keys[5], (128,), fc1_in),
        wf2=u(keys[6], (128, 64), 128),        bf2=u(keys[7], (64,), 128),
        wf3=u(keys[8], (64, D_out), 64),       bf3=u(keys[9], (D_out,), 64),
    )


def cnn_reference(x, params):
    """Pure-JAX reference of the PyTorch forward (for verification)."""
    prec = jax.lax.Precision.HIGHEST

    def conv1d(h, w, b):
        y = jax.lax.conv_general_dilated(
            h, w, window_strides=(1,), padding="VALID",
            dimension_numbers=("NCH", "OIH", "NCH"), precision=prec)
        return y + b[None, :, None]

    def pool(y):
        n, c, l = y.shape
        return jnp.max(y[:, :, :(l // 2) * 2].reshape(n, c, l // 2, 2), axis=-1)

    h = pool(jax.nn.relu(conv1d(x, params["w1"], params["b1"])))
    h = pool(jax.nn.relu(conv1d(h, params["w2"], params["b2"])))
    h = h.reshape(h.shape[0], -1)
    h = jax.nn.relu(jnp.dot(h, params["wf1"], precision=prec) + params["bf1"])
    h = jax.nn.relu(jnp.dot(h, params["wf2"], precision=prec) + params["bf2"])
    return jnp.dot(h, params["wf3"], precision=prec) + params["bf3"]


if __name__ == "__main__":
    N, D_in, D_out = 2, 64, 10       # l_out = ((64-4)//2 - 4)//2 = 13
    key = jax.random.PRNGKey(0)
    kx, kp = jax.random.split(key)
    x = jax.random.normal(kx, (N, 1, D_in), jnp.float32)
    params = init_params(kp, D_in, D_out)

    out = jax.block_until_ready(cnn_forward(x, params))
    ref = jax.block_until_ready(cnn_reference(x, params))

    assert out.shape == (N, D_out)
    # All-f32 run; tolerance leaves slack for MXU bf16-pass decomposition.
    assert jnp.allclose(out, ref, atol=1e-2, rtol=1e-2), (out, ref)
    print("KERNEL_OK")
</pallas_src>

<mosaic_0001>
module attributes {stable_mosaic.version = 11 : i64} {
  func.func @_cnn_kernel(%arg0: i32, %arg1: memref<8x64xf32, #tpu.memory_space<vmem>>, %arg2: memref<64x384xf32, #tpu.memory_space<vmem>>, %arg3: memref<1x384xf32, #tpu.memory_space<vmem>>, %arg4: memref<384x512xf32, #tpu.memory_space<vmem>>, %arg5: memref<1x512xf32, #tpu.memory_space<vmem>>, %arg6: memref<512x128xf32, #tpu.memory_space<vmem>>, %arg7: memref<1x128xf32, #tpu.memory_space<vmem>>, %arg8: memref<128x128xf32, #tpu.memory_space<vmem>>, %arg9: memref<1x128xf32, #tpu.memory_space<vmem>>, %arg10: memref<128x128xf32, #tpu.memory_space<vmem>>, %arg11: memref<1x128xf32, #tpu.memory_space<vmem>>, %arg12: memref<8x128xf32, #tpu.memory_space<vmem>>) attributes {dimension_semantics = [#tpu.dimension_semantics<parallel>], iteration_bounds = array<i64: 1>, scalar_prefetch = 0 : i64, scratch_operands = 0 : i64, tpu.core_type = #tpu.core_type<tc>, window_params = [{transform_indices = @transform_0, window_bounds = array<i64: 8, 64>}, {pipeline_mode = #tpu.pipeline_mode<synchronous>, transform_indices = @transform_1, window_bounds = array<i64: 64, 384>}, {pipeline_mode = #tpu.pipeline_mode<synchronous>, transform_indices = @transform_2, window_bounds = array<i64: 1, 384>}, {pipeline_mode = #tpu.pipeline_mode<synchronous>, transform_indices = @transform_3, window_bounds = array<i64: 384, 512>}, {pipeline_mode = #tpu.pipeline_mode<synchronous>, transform_indices = @transform_4, window_bounds = array<i64: 1, 512>}, {pipeline_mode = #tpu.pipeline_mode<synchronous>, transform_indices = @transform_5, window_bounds = array<i64: 512, 128>}, {pipeline_mode = #tpu.pipeline_mode<synchronous>, transform_indices = @transform_6, window_bounds = array<i64: 1, 128>}, {pipeline_mode = #tpu.pipeline_mode<synchronous>, transform_indices = @transform_7, window_bounds = array<i64: 128, 128>}, {pipeline_mode = #tpu.pipeline_mode<synchronous>, transform_indices = @transform_8, window_bounds = array<i64: 1, 128>}, {pipeline_mode = #tpu.pipeline_mode<synchronous>, transform_indices = @transform_9, window_bounds = array<i64: 128, 128>}, {pipeline_mode = #tpu.pipeline_mode<synchronous>, transform_indices = @transform_10, window_bounds = array<i64: 1, 128>}, {transform_indices = @transform_11, window_bounds = array<i64: 8, 128>}]} {
    %c0 = arith.constant 0 : index
    %c0_0 = arith.constant 0 : index
    %0 = vector.load %arg1[%c0, %c0_0] : memref<8x64xf32, #tpu.memory_space<vmem>>, vector<8x64xf32>
    %c0_1 = arith.constant 0 : index
    %c0_2 = arith.constant 0 : index
    %1 = vector.load %arg2[%c0_1, %c0_2] : memref<64x384xf32, #tpu.memory_space<vmem>>, vector<64x384xf32>
    %cst = arith.constant dense<0.000000e+00> : vector<8x384xf32>
    %2 = tpu.matmul %0, %1, %cst {dimension_numbers = #tpu.dot_dimension_numbers<[1], [0], [0], [1], [0, 0, 1, 1], [], []>} : vector<8x64xf32>, vector<64x384xf32>, vector<8x384xf32> -> vector<8x384xf32>
    %c0_3 = arith.constant 0 : index
    %c0_4 = arith.constant 0 : index
    %3 = vector.load %arg3[%c0_3, %c0_4] : memref<1x384xf32, #tpu.memory_space<vmem>>, vector<1x384xf32>
    %4 = vector.broadcast %3 : vector<1x384xf32> to vector<8x384xf32>
    %5 = arith.addf %2, %4 : vector<8x384xf32>
    %cst_5 = arith.constant 0.000000e+00 : f32
    %6 = vector.broadcast %cst_5 : f32 to vector<8x384xf32>
    %7 = arith.maximumf %5, %6 : vector<8x384xf32>
    %c378_i32 = arith.constant 378 : i32
    %8 = tpu.dynamic_rotate %7 by %c378_i32 dim 1 : vector<8x384xf32>, i32 -> vector<8x384xf32>
    %9 = arith.maximumf %7, %8 : vector<8x384xf32>
    %c0_6 = arith.constant 0 : index
    %c0_7 = arith.constant 0 : index
    %10 = vector.load %arg4[%c0_6, %c0_7] : memref<384x512xf32, #tpu.memory_space<vmem>>, vector<384x512xf32>
    %cst_8 = arith.constant dense<0.000000e+00> : vector<8x512xf32>
    %11 = tpu.matmul %9, %10, %cst_8 {dimension_numbers = #tpu.dot_dimension_numbers<[1], [0], [0], [1], [0, 0, 1, 1], [], []>} : vector<8x384xf32>, vector<384x512xf32>, vector<8x512xf32> -> vector<8x512xf32>
    %c0_9 = arith.constant 0 : index
    %c0_10 = arith.constant 0 : index
    %12 = vector.load %arg5[%c0_9, %c0_10] : memref<1x512xf32, #tpu.memory_space<vmem>>, vector<1x512xf32>
    %13 = vector.broadcast %12 : vector<1x512xf32> to vector<8x512xf32>
    %14 = arith.addf %11, %13 : vector<8x512xf32>
    %cst_11 = arith.constant 0.000000e+00 : f32
    %15 = vector.broadcast %cst_11 : f32 to vector<8x512xf32>
    %16 = arith.maximumf %14, %15 : vector<8x512xf32>
    %c496_i32 = arith.constant 496 : i32
    %17 = tpu.dynamic_rotate %16 by %c496_i32 dim 1 : vector<8x512xf32>, i32 -> vector<8x512xf32>
    %18 = arith.maximumf %16, %17 : vector<8x512xf32>
    %c0_12 = arith.constant 0 : index
    %c0_13 = arith.constant 0 : index
    %19 = vector.load %arg6[%c0_12, %c0_13] : memref<512x128xf32, #tpu.memory_space<vmem>>, vector<512x128xf32>
    %cst_14 = arith.constant dense<0.000000e+00> : vector<8x128xf32>
    %20 = tpu.matmul %18, %19, %cst_14 {dimension_numbers = #tpu.dot_dimension_numbers<[1], [0], [0], [1], [0, 0, 1, 1], [], []>} : vector<8x512xf32>, vector<512x128xf32>, vector<8x128xf32> -> vector<8x128xf32>
    %c0_15 = arith.constant 0 : index
    %c0_16 = arith.constant 0 : index
    %21 = vector.load %arg7[%c0_15, %c0_16] : memref<1x128xf32, #tpu.memory_space<vmem>>, vector<1x128xf32>
    %22 = vector.broadcast %21 : vector<1x128xf32> to vector<8x128xf32>
    %23 = arith.addf %20, %22 : vector<8x128xf32>
    %cst_17 = arith.constant 0.000000e+00 : f32
    %24 = vector.broadcast %cst_17 : f32 to vector<8x128xf32>
    %25 = arith.maximumf %23, %24 : vector<8x128xf32>
    %c0_18 = arith.constant 0 : index
    %c0_19 = arith.constant 0 : index
    %26 = vector.load %arg8[%c0_18, %c0_19] : memref<128x128xf32, #tpu.memory_space<vmem>>, vector<128x128xf32>
    %cst_20 = arith.constant dense<0.000000e+00> : vector<8x128xf32>
    %27 = tpu.matmul %25, %26, %cst_20 {dimension_numbers = #tpu.dot_dimension_numbers<[1], [0], [0], [1], [0, 0, 1, 1], [], []>} : vector<8x128xf32>, vector<128x128xf32>, vector<8x128xf32> -> vector<8x128xf32>
    %c0_21 = arith.constant 0 : index
    %c0_22 = arith.constant 0 : index
    %28 = vector.load %arg9[%c0_21, %c0_22] : memref<1x128xf32, #tpu.memory_space<vmem>>, vector<1x128xf32>
    %29 = vector.broadcast %28 : vector<1x128xf32> to vector<8x128xf32>
    %30 = arith.addf %27, %29 : vector<8x128xf32>
    %cst_23 = arith.constant 0.000000e+00 : f32
    %31 = vector.broadcast %cst_23 : f32 to vector<8x128xf32>
    %32 = arith.maximumf %30, %31 : vector<8x128xf32>
    %c0_24 = arith.constant 0 : index
    %c0_25 = arith.constant 0 : index
    %33 = vector.load %arg10[%c0_24, %c0_25] : memref<128x128xf32, #tpu.memory_space<vmem>>, vector<128x128xf32>
    %cst_26 = arith.constant dense<0.000000e+00> : vector<8x128xf32>
    %34 = tpu.matmul %32, %33, %cst_26 {dimension_numbers = #tpu.dot_dimension_numbers<[1], [0], [0], [1], [0, 0, 1, 1], [], []>} : vector<8x128xf32>, vector<128x128xf32>, vector<8x128xf32> -> vector<8x128xf32>
    %c0_27 = arith.constant 0 : index
    %c0_28 = arith.constant 0 : index
    %35 = vector.load %arg11[%c0_27, %c0_28] : memref<1x128xf32, #tpu.memory_space<vmem>>, vector<1x128xf32>
    %36 = vector.broadcast %35 : vector<1x128xf32> to vector<8x128xf32>
    %37 = arith.addf %34, %36 : vector<8x128xf32>
    %c0_29 = arith.constant 0 : index
    %c0_30 = arith.constant 0 : index
    %38 = vector.load %arg12[%c0_29, %c0_30] : memref<8x128xf32, #tpu.memory_space<vmem>>, vector<8x128xf32>
    tpu.vector_store %arg12[%c0_29, %c0_30], %37 {strides = array<i32>} : memref<8x128xf32, #tpu.memory_space<vmem>>, vector<8x128xf32>,
    return
  }
  func.func @transform_0(%arg0: i32) -> (i32, i32) {
    %c0_i32 = arith.constant 0 : i32
    %c0_i32_0 = arith.constant 0 : i32
    return %arg0, %c0_i32 : i32, i32
  }
  func.func @transform_1(%arg0: i32) -> (i32, i32) {
    %c0_i32 = arith.constant 0 : i32
    %c0_i32_0 = arith.constant 0 : i32
    %c0_i32_1 = arith.constant 0 : i32
    return %c0_i32, %c0_i32_0 : i32, i32
  }
  func.func @transform_2(%arg0: i32) -> (i32, i32) {
    %c0_i32 = arith.constant 0 : i32
    %c0_i32_0 = arith.constant 0 : i32
    %c0_i32_1 = arith.constant 0 : i32
    return %c0_i32, %c0_i32_0 : i32, i32
  }
  func.func @transform_3(%arg0: i32) -> (i32, i32) {
    %c0_i32 = arith.constant 0 : i32
    %c0_i32_0 = arith.constant 0 : i32
    %c0_i32_1 = arith.constant 0 : i32
    return %c0_i32, %c0_i32_0 : i32, i32
  }
  func.func @transform_4(%arg0: i32) -> (i32, i32) {
    %c0_i32 = arith.constant 0 : i32
    %c0_i32_0 = arith.constant 0 : i32
    %c0_i32_1 = arith.constant 0 : i32
    return %c0_i32, %c0_i32_0 : i32, i32
  }
  func.func @transform_5(%arg0: i32) -> (i32, i32) {
    %c0_i32 = arith.constant 0 : i32
    %c0_i32_0 = arith.constant 0 : i32
    %c0_i32_1 = arith.constant 0 : i32
    return %c0_i32, %c0_i32_0 : i32, i32
  }
  func.func @transform_6(%arg0: i32) -> (i32, i32) {
    %c0_i32 = arith.constant 0 : i32
    %c0_i32_0 = arith.constant 0 : i32
    %c0_i32_1 = arith.constant 0 : i32
    return %c0_i32, %c0_i32_0 : i32, i32
  }
  func.func @transform_7(%arg0: i32) -> (i32, i32) {
    %c0_i32 = arith.constant 0 : i32
    %c0_i32_0 = arith.constant 0 : i32
    %c0_i32_1 = arith.constant 0 : i32
    return %c0_i32, %c0_i32_0 : i32, i32
  }
  func.func @transform_8(%arg0: i32) -> (i32, i32) {
    %c0_i32 = arith.constant 0 : i32
    %c0_i32_0 = arith.constant 0 : i32
    %c0_i32_1 = arith.constant 0 : i32
    return %c0_i32, %c0_i32_0 : i32, i32
  }
  func.func @transform_9(%arg0: i32) -> (i32, i32) {
    %c0_i32 = arith.constant 0 : i32
    %c0_i32_0 = arith.constant 0 : i32
    %c0_i32_1 = arith.constant 0 : i32
    return %c0_i32, %c0_i32_0 : i32, i32
  }
  func.func @transform_10(%arg0: i32) -> (i32, i32) {
    %c0_i32 = arith.constant 0 : i32
    %c0_i32_0 = arith.constant 0 : i32
    %c0_i32_1 = arith.constant 0 : i32
    return %c0_i32, %c0_i32_0 : i32, i32
  }
  func.func @transform_11(%arg0: i32) -> (i32, i32) {
    %c0_i32 = arith.constant 0 : i32
    %c0_i32_0 = arith.constant 0 : i32
    return %arg0, %c0_i32 : i32, i32
  }
}

</mosaic_0001>

<bundles_post_ra>
// kernel: tpu_custom_call.1
= control target key start
LH: loop header
LB: loop body
LE: loop exit
PB: predicated region body
PF: predicated region fallthrough
CT: control target
= control target key end

     0   :  { %16 = vsyncpa [#allocation3], 0  ;;  %s2281_s0 = inlined_call_operand.hbm [shape: f32[8,64], index: 0, kind: input, shape index: {}]   ;;  %s2282_s1 = inlined_call_operand.hbm [shape: f32[64,384], index: 1, kind: input, shape index: {}]   ;;  %s2283_s2 = inlined_call_operand.vmem [shape: f32[1,384], index: 2, kind: input, shape index: {}]   ;;  %s2284_s3 = inlined_call_operand.hbm [shape: f32[384,512], index: 3, kind: input, shape index: {}]   ;;  %s2285_s4 = inlined_call_operand.vmem [shape: f32[1,512], index: 4, kind: input, shape index: {}]   ;;  %s2286_s5 = inlined_call_operand.hbm [shape: f32[512,128], index: 5, kind: input, shape index: {}]   ;;  %s2287_s6 = inlined_call_operand.vmem [shape: f32[1,128], index: 6, kind: input, shape index: {}]   ;;  %s2288_s7 = inlined_call_operand.hbm [shape: f32[128,128], index: 7, kind: input, shape index: {}]   ;;  %s2289_s8 = inlined_call_operand.vmem [shape: f32[1,128], index: 8, kind: input, shape index: {}]   ;;  %s2290_s9 = inlined_call_operand.hbm [shape: f32[128,128], index: 9, kind: input, shape index: {}]   ;;  %s2291_s10 = inlined_call_operand.vmem [shape: f32[1,128], index: 10, kind: input, shape index: {}]   ;;  %s2292_s11 = inlined_call_operand.hbm [shape: f32[8,128], index: 11, kind: output, shape index: {}]  }
   0x1   :  { %17 = vsyncpa [#allocation6], 0 }
   0x2   :  { %18 = vsyncpa [#allocation9], 0 }
   0x3   :  { %19 = vsyncpa [#allocation12], 0 }
   0x4   :  { %20 = vsyncpa [#allocation4], 0  ;;  %s2005_s17 = smov [#allocation5]   ;;  %s1841_s21 = scalar_lea.hbm %s2282_s1, 3072 }
   0x5   :  { %s36_s18 = sshll.u32 %s2005_s17, 4  ;;  %p1842_p0 = scmp.ne.s32.totalorder %s2282_s1, %s1841_s21  ;;  %s37_s18 = int_to_ptr.vmem [resolvable:$true] %s36_s18 }
   0x6   :  { %p1845_p1 = scmp.lt.u32.totalorder %s1841_s21, %s2282_s1 }
   0x8   :  { %p1847_p2 = pnand %p1845_p1, %p1842_p0 }
   0xa   :  { %1850 = shalt.err (!%p1847_p2)
}
   0xb   :  { %s1851_s26 = scalar_lea.vmem %s37_s18, 3072  ;;  %p1856_p4 = scmp.lt.s32.totalorder %s37_s18, %s37_s18 }
   0xc   :  { %p1852_p3 = scmp.ne.s32.totalorder %s37_s18, %s1851_s26  ;;  %p1857_p5 = scmp.lt.s32.totalorder %s1851_s26, %s1851_s26 }
   0xe   :  { %p1858_p6 = por %p1857_p5, %p1856_p4 }
  0x10   :  { %p1859_p7 = pnand %p1858_p6, %p1852_p3 }
  0x12   :  { %1862 = shalt.err (!%p1859_p7)
}
  0x13   :  { %s2006_s27 = smov 384   ;;  %s2007_s28 = smov 24  }
  0x14   :  { %42 = dma.hbm_to_vmem [thread:$0]  %s2282_s1, 3072, %s37_s18, [#allocation6], %s2006_s27, %s2006_s27, %s2007_s28  }
  0x15   :  { %s2008_s12 = smov [#allocation8]   ;;  %s1863_s16 = scalar_lea.hbm %s2286_s5, 8192 }
  0x16   :  { %s64_s13 = sshll.u32 %s2008_s12, 4  ;;  %p1864_p8 = scmp.ne.s32.totalorder %s2286_s5, %s1863_s16  ;;  %s65_s13 = int_to_ptr.vmem [resolvable:$true] %s64_s13 }
  0x17   :  { %p1867_p9 = scmp.lt.u32.totalorder %s1863_s16, %s2286_s5 }
  0x19   :  { %p1869_p10 = pnand %p1867_p9, %p1864_p8 }
  0x1b   :  { %1872 = shalt.err (!%p1869_p10)
}
  0x1c   :  { %s1873_s22 = scalar_lea.vmem %s65_s13, 8192  ;;  %p1878_p12 = scmp.lt.s32.totalorder %s65_s13, %s65_s13 }
  0x1d   :  { %p1874_p11 = scmp.ne.s32.totalorder %s65_s13, %s1873_s22  ;;  %p1879_p13 = scmp.lt.s32.totalorder %s1873_s22, %s1873_s22 }
  0x1f   :  { %p1880_p0 = por %p1879_p13, %p1878_p12 }
  0x21   :  { %p1881_p1 = pnand %p1880_p0, %p1874_p11 }
  0x23   :  { %1884 = shalt.err (!%p1881_p1)
}
  0x24   :  { %s2009_s1 = smov 128   ;;  %s2010_s18 = smov 8  }
  0x25   :  { %70 = dma.hbm_to_vmem [thread:$0]  %s2286_s5, 8192, %s65_s13, [#allocation9], %s2009_s1, %s2009_s1, %s2010_s18  }
  0x26   :  { %s2011_s25 = smov [#allocation2]   ;;  %s2012_s27 = smov [#allocation7]  }
  0x27   :  { %s27_s26 = sshll.u32 %s2011_s25, 4  ;;  %s50_s28 = sshll.u32 %s2012_s27, 4  ;;  %s28_s26 = int_to_ptr.vmem [resolvable:$true] %s27_s26  ;;  %s2110_s28 = int_to_ptr.vmem [resolvable:$true] %s50_s28 }
  0x28   :  { %s1885_s12 = scalar_lea.hbm %s2281_s0, 128 }
  0x29   :  { %p1886_p2 = scmp.ne.s32.totalorder %s2281_s0, %s1885_s12  ;;  %p1889_p3 = scmp.lt.u32.totalorder %s1885_s12, %s2281_s0 }
  0x2b   :  { %p1891_p4 = pnand %p1889_p3, %p1886_p2 }
  0x2d   :  { %1894 = shalt.err (!%p1891_p4)
}
  0x2e   :  { %s1895_s5 = scalar_lea.vmem %s28_s26, 128  ;;  %p1900_p6 = scmp.lt.s32.totalorder %s28_s26, %s28_s26 }
  0x2f   :  { %p1896_p5 = scmp.ne.s32.totalorder %s28_s26, %s1895_s5  ;;  %p1901_p7 = scmp.lt.s32.totalorder %s1895_s5, %s1895_s5 }
  0x31   :  { %p1902_p8 = por %p1901_p7, %p1900_p6 }
  0x33   :  { %p1903_p9 = pnand %p1902_p8, %p1896_p5 }
  0x35   :  { %1906 = shalt.err (!%p1903_p9)
}
  0x36   :  { %30 = dma.hbm_to_vmem [thread:$0]  %s2281_s0, 128, %s28_s26, [#allocation3]  }
  0x37   :  { %s1907_s22 = scalar_lea.hbm %s2284_s3, 24576 }
  0x38   :  { %p1908_p10 = scmp.ne.s32.totalorder %s2284_s3, %s1907_s22  ;;  %p1911_p11 = scmp.lt.u32.totalorder %s1907_s22, %s2284_s3 }
  0x3a   :  { %p1913_p12 = pnand %p1911_p11, %p1908_p10 }
  0x3c   :  { %1916 = shalt.err (!%p1913_p12)
}
  0x3d   :  { %s1917_s29 = scalar_lea.vmem %s2110_s28, 24576  ;;  %p1922_p0 = scmp.lt.s32.totalorder %s2110_s28, %s2110_s28 }
  0x3e   :  { %p1918_p13 = scmp.ne.s32.totalorder %s2110_s28, %s1917_s29  ;;  %p1923_p1 = scmp.lt.s32.totalorder %s1917_s29, %s1917_s29 }
  0x40   :  { %p1924_p2 = por %p1923_p1, %p1922_p0 }
  0x42   :  { %p1925_p3 = pnand %p1924_p2, %p1918_p13 }
  0x44   :  { %1928 = shalt.err (!%p1925_p3)
}
  0x45   :  { %s2013_s0 = smov 512   ;;  %s2014_s26 = smov 32  }
  0x46   :  { %56 = dma.hbm_to_vmem [thread:$0]  %s2284_s3, 24576, %s2110_s28, [#allocation6], %s2013_s0, %s2013_s0, %s2014_s26  }
  0x47   :  { %s2015_s14 = smov [#allocation10]   ;;  %s2016_s16 = smov [#allocation11]  }
  0x48   :  { %s78_s15 = sshll.u32 %s2015_s14, 4  ;;  %s92_s17 = sshll.u32 %s2016_s16, 4  ;;  %s79_s15 = int_to_ptr.vmem [resolvable:$true] %s78_s15  ;;  %s2141_s17 = int_to_ptr.vmem [resolvable:$true] %s92_s17 }
  0x49   :  { %s1929_s19 = scalar_lea.hbm %s2288_s7, 2048 }
  0x4a   :  { %p1930_p4 = scmp.ne.s32.totalorder %s2288_s7, %s1929_s19  ;;  %p1933_p5 = scmp.lt.u32.totalorder %s1929_s19, %s2288_s7 }
  0x4c   :  { %p1935_p6 = pnand %p1933_p5, %p1930_p4 }
  0x4e   :  { %1938 = shalt.err (!%p1935_p6)
}
  0x4f   :  { %s1939_s3 = scalar_lea.vmem %s79_s15, 2048  ;;  %p1944_p8 = scmp.lt.s32.totalorder %s79_s15, %s79_s15 }
  0x50   :  { %p1940_p7 = scmp.ne.s32.totalorder %s79_s15, %s1939_s3  ;;  %p1945_p9 = scmp.lt.s32.totalorder %s1939_s3, %s1939_s3 }
  0x52   :  { %p1946_p10 = por %p1945_p9, %p1944_p8 }
  0x54   :  { %p1947_p11 = pnand %p1946_p10, %p1940_p7 }
  0x56   :  { %1950 = shalt.err (!%p1947_p11)
}
  0x57   :  { %84 = dma.hbm_to_vmem [thread:$0]  %s2288_s7, 2048, %s79_s15, [#allocation9], %s2009_s1, %s2009_s1, %s2010_s18  }
  0x58   :  { %s1951_s29 = scalar_lea.hbm %s2290_s9, 2048 }
  0x59   :  { %p1952_p12 = scmp.ne.s32.totalorder %s2290_s9, %s1951_s29  ;;  %p1955_p13 = scmp.lt.u32.totalorder %s1951_s29, %s2290_s9 }
  0x5b   :  { %p1957_p0 = pnand %p1955_p13, %p1952_p12 }
  0x5d   :  { %1960 = shalt.err (!%p1957_p0)
}
  0x5e   :  { %s1961_s14 = scalar_lea.vmem %s2141_s17, 2048  ;;  %p1966_p2 = scmp.lt.s32.totalorder %s2141_s17, %s2141_s17 }
  0x5f   :  { %p1962_p1 = scmp.ne.s32.totalorder %s2141_s17, %s1961_s14  ;;  %p1967_p3 = scmp.lt.s32.totalorder %s1961_s14, %s1961_s14 }
  0x61   :  { %p1968_p4 = por %p1967_p3, %p1966_p2 }
  0x63   :  { %p1969_p5 = pnand %p1968_p4, %p1962_p1 }
  0x65   :  { %1972 = shalt.err (!%p1969_p5)
}
  0x66   :  { %98 = dma.hbm_to_vmem [thread:$0]  %s2290_s9, 2048, %s2141_s17, [#allocation12], %s2009_s1, %s2009_s1, %s2010_s18  }
  0x67   :  { %1995 = dma.done.wait [#allocation3], 128  }
  0x68   :  { %1996 = vsyncadd [#allocation3], 4294967168 }
  0x69   :  { %1997 = dma.done.wait [#allocation6], 27648  }
  0x6a   :  { %1998 = vsyncadd [#allocation6], 4294939648 }
  0x6b   :  { %1999 = dma.done.wait [#allocation9], 10240  }
  0x6c   :  { %2000 = vsyncadd [#allocation9], 4294957056 }
  0x6d   :  { %2001 = dma.done.wait [#allocation12], 2048  }
  0x6e   :  { %2002 = vsyncadd [#allocation12], 4294965248  ;;  %v2017_v0 = vmov 0.0|0.0   ;;  %v2018_v1 = vmov 0.0   ;;  %vm2019_vm0 = vmmov 0   ;;  %v121_v2 = vld [vmem:[#allocation5 + $0x8] sm:$0xff] }
  0x6f   :  { %1484 = vmatprep.subr.bf16.mxu1 %v2017_v0  ;;  %229 = vmatprep.mubr.f32.mxu0 %v2018_v1  ;;  %v124_v3 = vld [vmem:[#allocation5 + $0x20] sm:$0xff]  ;;  %v123_v6 = vld [vmem:[#allocation5 + $0x18] sm:$0xff]  ;;  %v122_v7 = vld [vmem:[#allocation5 + $0x10] sm:$0xff]  ;;  %vm161_vm1 = vcmask 523264   ;;  %s2022_s21 = smov [#allocation13]  }
  0x70   :  { %1395 = vmatprep.mubr.msk.f32.mxu1 %vm2019_vm0, %v2018_v1  ;;  %v120_v4 = vld [vmem:[#allocation5] sm:$0xff]  ;;  %v1468_v5 = vpack.c.bf16 %v124_v3, %v121_v2  ;;  %v125_v8 = vld [vmem:[#allocation5 + $0x28] sm:$0xff]  ;;  %v127_v11 = vld [vmem:[#allocation5 + $0x38] sm:$0xff]  ;;  %s1249_s22 = sshll.u32 %s2022_s21, 4  ;;  %s1250_s22 = int_to_ptr.vmem [resolvable:$true] %s1249_s22 }
  0x71   :  { %v1470_v9 = vpack.c.bf16 %v123_v6, %v120_v4  ;;  %v1485_v10 = vpack.c.bf16 %v125_v8, %v122_v7  ;;  %v130_v12 = vld [vmem:[#allocation5 + $0x50] sm:$0xff]  ;;  %v129_v15 = vld [vmem:[#allocation5 + $0x48] sm:$0xff]  ;;  %v128_v16 = vld [vmem:[#allocation5 + $0x40] sm:$0xff]  ;;  %s1973_s23 = scalar_lea.vmem %s1250_s22, 128  ;;  %p1978_p7 = scmp.lt.s32.totalorder %s1250_s22, %s1250_s22 }
  0x72   :  { %v126_v13 = vld [vmem:[#allocation5 + $0x30] sm:$0xff]  ;;  %1469 = vmatprep.subr.bf16.mxu0 %v1468_v5  ;;  %v1472_v14 = vpack.c.bf16 %v130_v12, %v127_v11  ;;  %v131_v17 = vld [vmem:[#allocation5 + $0x58] sm:$0xff]  ;;  %v133_v20 = vld [vmem:[#allocation5 + $0x68] sm:$0xff]  ;;  %p1974_p6 = scmp.ne.s32.totalorder %s1250_s22, %s1973_s23  ;;  %p1979_p8 = scmp.lt.s32.totalorder %s1973_s23, %s1973_s23 }
  0x73   :  { %1471 = vmatpush1.bf16.msra.mxu0 %v1470_v9  ;;  %1486 = vmatpush3.bf16.msra.mxu1 %v1485_v10  ;;  %v1474_v18 = vpack.c.bf16 %v129_v15, %v126_v13  ;;  %v1488_v19 = vpack.c.bf16 %v131_v17, %v128_v16  ;;  %v136_v21 = vld [vmem:[#allocation5 + $0x80] sm:$0xff]  ;;  %v135_v24 = vld [vmem:[#allocation5 + $0x78] sm:$0xff]  ;;  %v134_v25 = vld [vmem:[#allocation5 + $0x70] sm:$0xff] }
  0x74   :  { %v132_v22 = vld [vmem:[#allocation5 + $0x60] sm:$0xff]  ;;  %1473 = vmatprep.subr.bf16.mxu0 %v1472_v14  ;;  %1487 = vmatprep.subr.bf16.mxu1 %v2017_v0  ;;  %v1476_v23 = vpack.c.bf16 %v136_v21, %v133_v20  ;;  %v137_v26 = vld [vmem:[#allocation5 + $0x88] sm:$0xff]  ;;  %v139_v27 = vld [vmem:[#allocation5 + $0x98] sm:$0xff]  ;;  %p1980_p9 = por %p1979_p8, %p1978_p7 }
  0x75   :  { %v142_v28 = vld [vmem:[#allocation5 + $0xb0] sm:$0xff]  ;;  %v1478_v29 = vpack.c.bf16 %v135_v24, %v132_v22  ;;  %v1491_v30 = vpack.c.bf16 %v137_v26, %v134_v25  ;;  %v141_v33 = vld [vmem:[#allocation5 + $0xa8] sm:$0xff]  ;;  %v140_v34 = vld [vmem:[#allocation5 + $0xa0] sm:$0xff] }
  0x76   :  { %v138_v31 = vld [vmem:[#allocation5 + $0x90] sm:$0xff]  ;;  %v1480_v32 = vpack.c.bf16 %v142_v28, %v139_v27  ;;  %v143_v35 = vld [vmem:[#allocation5 + $0xb8] sm:$0xff]  ;;  %v325_v39 = vld [vmem:[#allocation7 + $0x8] sm:$0xff]  ;;  %p1981_p10 = pnand %p1980_p9, %p1974_p6 }
  0x77   :  { %1475 = vmatpush1.bf16.msra.mxu0 %v1474_v18  ;;  %1489 = vmatpush3.bf16.msra.mxu1 %v1488_v19  ;;  %v1482_v36 = vpack.c.bf16 %v141_v33, %v138_v31  ;;  %v1494_v37 = vpack.c.bf16 %v143_v35, %v140_v34  ;;  %v119_v38 = vld [vmem:[#allocation2] sm:$0xff]  ;;  %v329_v40 = vld [vmem:[#allocation7 + $0x28] sm:$0xff]  ;;  %v324_v44 = vld [vmem:[#allocation7] sm:$0xff] }
  0x78   :  { %1477 = vmatprep.subr.bf16.mxu0 %v1476_v23  ;;  %1490 = vmatprep.subr.bf16.mxu1 %v2017_v0  ;;  %v327_v41 = vld [vmem:[#allocation7 + $0x18] sm:$0xff]  ;;  %v1496_v42 = vpack.c.bf16 %v329_v40, %v325_v39  ;;  %v328_v45 = vld [vmem:[#allocation7 + $0x20] sm:$0xff]  ;;  %v326_v48 = vld [vmem:[#allocation7 + $0x10] sm:$0xff] }
  0x79   :  { %v331_v43 = vld [vmem:[#allocation7 + $0x38] sm:$0xff]  ;;  %v1498_v47 = vpack.c.bf16 %v328_v45, %v324_v44  ;;  %v330_v49 = vld [vmem:[#allocation7 + $0x30] sm:$0xff]  ;;  %v333_v50 = vld [vmem:[#allocation7 + $0x48] sm:$0xff] }
  0x7a   :  { %v1592_v46 = vpack.c.bf16 %v331_v43, %v327_v41  ;;  %v1594_v51 = vpack.c.bf16 %v330_v49, %v326_v48  ;;  %v337_v52 = vld [vmem:[#allocation7 + $0x68] sm:$0xff]  ;;  %v335_v53 = vld [vmem:[#allocation7 + $0x58] sm:$0xff]  ;;  %v332_v57 = vld [vmem:[#allocation7 + $0x40] sm:$0xff] }
  0x7b   :  { %1479 = vmatpush1.bf16.msra.mxu0 %v1478_v29  ;;  %1492 = vmatpush3.bf16.msra.mxu1 %v1491_v30  ;;  %v339_v54 = vld [vmem:[#allocation7 + $0x78] sm:$0xff]  ;;  %v1500_v55 = vpack.c.bf16 %v337_v52, %v333_v50  ;;  %v336_v58 = vld [vmem:[#allocation7 + $0x60] sm:$0xff]  ;;  %v334_v59 = vld [vmem:[#allocation7 + $0x50] sm:$0xff] }
  0x7c   :  { %1481 = vmatprep.subr.bf16.mxu0 %v1480_v32  ;;  %1493 = vmatprep.subr.bf16.mxu1 %v2017_v0  ;;  %v1596_v56 = vpack.c.bf16 %v339_v54, %v335_v53  ;;  %v1502_v60 = vpack.c.bf16 %v336_v58, %v332_v57  ;;  %v338_v61 = vld [vmem:[#allocation7 + $0x70] sm:$0xff]  ;;  %v341_v62 = vld [vmem:[#allocation7 + $0x88] sm:$0xff]  ;;  %v343_v4 = vld [vmem:[#allocation7 + $0x98] sm:$0xff] }
  0x7d   :  { %v345_v63 = vld [vmem:[#allocation7 + $0xa8] sm:$0xff]  ;;  %v1598_v2 = vpack.c.bf16 %v338_v61, %v334_v59  ;;  %v347_v5 = vld [vmem:[#allocation7 + $0xb8] sm:$0xff]  ;;  %v340_v6 = vld [vmem:[#allocation7 + $0x80] sm:$0xff] }
  0x7e   :  { %v1504_v3 = vpack.c.bf16 %v345_v63, %v341_v62  ;;  %v1600_v7 = vpack.c.bf16 %v347_v5, %v343_v4  ;;  %v344_v8 = vld [vmem:[#allocation7 + $0xa0] sm:$0xff]  ;;  %v342_v9 = vld [vmem:[#allocation7 + $0x90] sm:$0xff]  ;;  %v349_v12 = vld [vmem:[#allocation7 + $0xc8] sm:$0xff] }
  0x7f   :  { %1483 = vmatpush1.bf16.msra.mxu0 %v1482_v36  ;;  %1495 = vmatpush3.bf16.msra.mxu1 %v1494_v37  ;;  %v346_v10 = vld [vmem:[#allocation7 + $0xb0] sm:$0xff]  ;;  %v1506_v11 = vpack.c.bf16 %v344_v8, %v340_v6  ;;  %v353_v13 = vld [vmem:[#allocation7 + $0xe8] sm:$0xff]  ;;  %v351_v14 = vld [vmem:[#allocation7 + $0xd8] sm:$0xff] }
  0x80   :  { %1497 = vmatprep.subr.bf16.mxu0 %v1496_v42  ;;  %1593 = vmatprep.subr.bf16.mxu1 %v1592_v46  ;;  %v1602_v15 = vpack.c.bf16 %v346_v10, %v342_v9  ;;  %v1508_v16 = vpack.c.bf16 %v353_v13, %v349_v12  ;;  %v355_v17 = vld [vmem:[#allocation7 + $0xf8] sm:$0xff]  ;;  %v348_v18 = vld [vmem:[#allocation7 + $0xc0] sm:$0xff]  ;;  %v350_v21 = vld [vmem:[#allocation7 + $0xd0] sm:$0xff] }
  0x81   :  { %v352_v19 = vld [vmem:[#allocation7 + $0xe0] sm:$0xff]  ;;  %v1604_v20 = vpack.c.bf16 %v355_v17, %v351_v14  ;;  %v354_v22 = vld [vmem:[#allocation7 + $0xf0] sm:$0xff]  ;;  %v357_v23 = vld [vmem:[#allocation7 + $0x108] sm:$0xff] }
  0x82   :  { %1261 = vmatmul.mubr.msk.f32.vlgmr.msra.gmra.mrb[0].mxu0 %vm161_vm1, %v119_v38  ;;  %1396 = vmatmul.mubr.msk.f32.vlgmr.msra.gmra.mrb[0].mxu1 %vm161_vm1, %v119_v38  ;;  %v361_v24 = vld [vmem:[#allocation7 + $0x128] sm:$0xff]  ;;  %v359_v25 = vld [vmem:[#allocation7 + $0x118] sm:$0xff]  ;;  %v1510_v27 = vpack.c.bf16 %v352_v19, %v348_v18  ;;  %v1606_v28 = vpack.c.bf16 %v354_v22, %v350_v21  ;;  %v356_v30 = vld [vmem:[#allocation7 + $0x100] sm:$0xff] }
  0x83   :  { %1499 = vmatpush1.bf16.msra.mxu0 %v1498_v47  ;;  %1595 = vmatpush1.bf16.msra.mxu1 %v1594_v51  ;;  %v363_v26 = vld [vmem:[#allocation7 + $0x138] sm:$0xff]  ;;  %v1512_v29 = vpack.c.bf16 %v361_v24, %v357_v23  ;;  %v360_v31 = vld [vmem:[#allocation7 + $0x120] sm:$0xff]  ;;  %v358_v32 = vld [vmem:[#allocation7 + $0x110] sm:$0xff] }
  0x84   :  { %1501 = vmatprep.subr.bf16.mxu0 %v1500_v55  ;;  %1597 = vmatprep.subr.bf16.mxu1 %v1596_v56  ;;  %v1608_v33 = vpack.c.bf16 %v363_v26, %v359_v25  ;;  %v362_v34 = vld [vmem:[#allocation7 + $0x130] sm:$0xff]  ;;  %v365_v35 = vld [vmem:[#allocation7 + $0x148] sm:$0xff]  ;;  %v367_v37 = vld [vmem:[#allocation7 + $0x158] sm:$0xff]  ;;  %v1514_v39 = vpack.c.bf16 %v360_v31, %v356_v30 }
  0x85   :  { %v369_v36 = vld [vmem:[#allocation7 + $0x168] sm:$0xff]  ;;  %v371_v38 = vld [vmem:[#allocation7 + $0x178] sm:$0xff]  ;;  %v1610_v40 = vpack.c.bf16 %v362_v34, %v358_v32  ;;  %v364_v42 = vld [vmem:[#allocation7 + $0x140] sm:$0xff] }
  0x86   :  { %v1516_v41 = vpack.c.bf16 %v369_v36, %v365_v35  ;;  %v368_v43 = vld [vmem:[#allocation7 + $0x160] sm:$0xff]  ;;  %v366_v44 = vld [vmem:[#allocation7 + $0x150] sm:$0xff]  ;;  %v1612_v45 = vpack.c.bf16 %v371_v38, %v367_v37  ;;  %v373_v47 = vld [vmem:[#allocation7 + $0x188] sm:$0xff] }
  0x87   :  { %1503 = vmatpush1.bf16.msra.mxu0 %v1502_v60  ;;  %1599 = vmatpush1.bf16.msra.mxu1 %v1598_v2  ;;  %v370_v46 = vld [vmem:[#allocation7 + $0x170] sm:$0xff]  ;;  %v377_v48 = vld [vmem:[#allocation7 + $0x1a8] sm:$0xff]  ;;  %v375_v49 = vld [vmem:[#allocation7 + $0x198] sm:$0xff]  ;;  %v1518_v51 = vpack.c.bf16 %v368_v43, %v364_v42 }
  0x88   :  { %1505 = vmatprep.subr.bf16.mxu0 %v1504_v3  ;;  %1601 = vmatprep.subr.bf16.mxu1 %v1600_v7  ;;  %v379_v50 = vld [vmem:[#allocation7 + $0x1b8] sm:$0xff]  ;;  %v1614_v52 = vpack.c.bf16 %v370_v46, %v366_v44  ;;  %v1520_v53 = vpack.c.bf16 %v377_v48, %v373_v47  ;;  %v372_v54 = vld [vmem:[#allocation7 + $0x180] sm:$0xff]  ;;  %v374_v56 = vld [vmem:[#allocation7 + $0x190] sm:$0xff] }
  0x89   :  { %v376_v55 = vld [vmem:[#allocation7 + $0x1a0] sm:$0xff]  ;;  %v1616_v57 = vpack.c.bf16 %v379_v50, %v375_v49  ;;  %v378_v58 = vld [vmem:[#allocation7 + $0x1b0] sm:$0xff]  ;;  %v381_v59 = vld [vmem:[#allocation7 + $0x1c8] sm:$0xff] }
  0x8a   :  { %v385_v60 = vld [vmem:[#allocation7 + $0x1e8] sm:$0xff]  ;;  %v383_v61 = vld [vmem:[#allocation7 + $0x1d8] sm:$0xff]  ;;  %v1522_v63 = vpack.c.bf16 %v376_v55, %v372_v54  ;;  %v1618_v2 = vpack.c.bf16 %v378_v58, %v374_v56  ;;  %v380_v4 = vld [vmem:[#allocation7 + $0x1c0] sm:$0xff] }
  0x8b   :  { %1507 = vmatpush1.bf16.msra.mxu0 %v1506_v11  ;;  %1603 = vmatpush1.bf16.msra.mxu1 %v1602_v15  ;;  %v387_v62 = vld [vmem:[#allocation7 + $0x1f8] sm:$0xff]  ;;  %v1524_v3 = vpack.c.bf16 %v385_v60, %v381_v59  ;;  %v384_v5 = vld [vmem:[#allocation7 + $0x1e0] sm:$0xff]  ;;  %v382_v6 = vld [vmem:[#allocation7 + $0x1d0] sm:$0xff] }
  0x8c   :  { %1509 = vmatprep.subr.bf16.mxu0 %v1508_v16  ;;  %1605 = vmatprep.subr.bf16.mxu1 %v1604_v20  ;;  %v1620_v7 = vpack.c.bf16 %v387_v62, %v383_v61  ;;  %v386_v8 = vld [vmem:[#allocation7 + $0x1f0] sm:$0xff]  ;;  %v389_v9 = vld [vmem:[#allocation7 + $0x208] sm:$0xff]  ;;  %v391_v11 = vld [vmem:[#allocation7 + $0x218] sm:$0xff]  ;;  %v1526_v13 = vpack.c.bf16 %v384_v5, %v380_v4 }
  0x8d   :  { %v393_v10 = vld [vmem:[#allocation7 + $0x228] sm:$0xff]  ;;  %v395_v12 = vld [vmem:[#allocation7 + $0x238] sm:$0xff]  ;;  %v1622_v14 = vpack.c.bf16 %v386_v8, %v382_v6  ;;  %v388_v16 = vld [vmem:[#allocation7 + $0x200] sm:$0xff] }
  0x8e   :  { %v1528_v15 = vpack.c.bf16 %v393_v10, %v389_v9  ;;  %v392_v17 = vld [vmem:[#allocation7 + $0x220] sm:$0xff]  ;;  %v390_v18 = vld [vmem:[#allocation7 + $0x210] sm:$0xff]  ;;  %v1624_v19 = vpack.c.bf16 %v395_v12, %v391_v11  ;;  %v397_v21 = vld [vmem:[#allocation7 + $0x248] sm:$0xff] }
  0x8f   :  { %1511 = vmatpush1.bf16.msra.mxu0 %v1510_v27  ;;  %1607 = vmatpush1.bf16.msra.mxu1 %v1606_v28  ;;  %v394_v20 = vld [vmem:[#allocation7 + $0x230] sm:$0xff]  ;;  %v401_v22 = vld [vmem:[#allocation7 + $0x268] sm:$0xff]  ;;  %v399_v23 = vld [vmem:[#allocation7 + $0x258] sm:$0xff]  ;;  %v1530_v25 = vpack.c.bf16 %v392_v17, %v388_v16 }
  0x90   :  { %1513 = vmatprep.subr.bf16.mxu0 %v1512_v29  ;;  %1609 = vmatprep.subr.bf16.mxu1 %v1608_v33  ;;  %v403_v24 = vld [vmem:[#allocation7 + $0x278] sm:$0xff]  ;;  %v1626_v26 = vpack.c.bf16 %v394_v20, %v390_v18  ;;  %v1532_v27 = vpack.c.bf16 %v401_v22, %v397_v21  ;;  %v396_v28 = vld [vmem:[#allocation7 + $0x240] sm:$0xff]  ;;  %v398_v30 = vld [vmem:[#allocation7 + $0x250] sm:$0xff] }
  0x91   :  { %v400_v29 = vld [vmem:[#allocation7 + $0x260] sm:$0xff]  ;;  %v1628_v31 = vpack.c.bf16 %v403_v24, %v399_v23  ;;  %v402_v32 = vld [vmem:[#allocation7 + $0x270] sm:$0xff]  ;;  %v405_v33 = vld [vmem:[#allocation7 + $0x288] sm:$0xff] }
  0x92   :  { %v409_v34 = vld [vmem:[#allocation7 + $0x2a8] sm:$0xff]  ;;  %v407_v35 = vld [vmem:[#allocation7 + $0x298] sm:$0xff]  ;;  %v1534_v37 = vpack.c.bf16 %v400_v29, %v396_v28  ;;  %v1630_v38 = vpack.c.bf16 %v402_v32, %v398_v30  ;;  %v406_v42 = vld [vmem:[#allocation7 + $0x290] sm:$0xff] }
  0x93   :  { %1515 = vmatpush1.bf16.msra.mxu0 %v1514_v39  ;;  %1611 = vmatpush1.bf16.msra.mxu1 %v1610_v40  ;;  %v411_v36 = vld [vmem:[#allocation7 + $0x2b8] sm:$0xff]  ;;  %v1536_v39 = vpack.c.bf16 %v409_v34, %v405_v33  ;;  %v404_v40 = vld [vmem:[#allocation7 + $0x280] sm:$0xff]  ;;  %v410_v44 = vld [vmem:[#allocation7 + $0x2b0] sm:$0xff]  ;;  %v146_v33 = vlaneseq }
  0x94   :  { %1517 = vmatprep.subr.bf16.mxu0 %v1516_v41  ;;  %1613 = vmatprep.subr.bf16.mxu1 %v1612_v45  ;;  %v408_v41 = vld [vmem:[#allocation7 + $0x2a0] sm:$0xff]  ;;  %v1632_v43 = vpack.c.bf16 %v411_v36, %v407_v35  ;;  %v413_v45 = vld [vmem:[#allocation7 + $0x2c8] sm:$0xff]  ;;  %v415_v47 = vld [vmem:[#allocation7 + $0x2d8] sm:$0xff]  ;;  %v1634_v50 = vpack.c.bf16 %v410_v44, %v406_v42 }
  0x95   :  { %v417_v46 = vld [vmem:[#allocation7 + $0x2e8] sm:$0xff]  ;;  %v419_v48 = vld [vmem:[#allocation7 + $0x2f8] sm:$0xff]  ;;  %v1538_v49 = vpack.c.bf16 %v408_v41, %v404_v40  ;;  %v414_v54 = vld [vmem:[#allocation7 + $0x2d0] sm:$0xff]  ;;  %v2185_v34 = vshrl.u32 %v146_v33, 7 }
  0x96   :  { %v1636_v55 = vpack.c.bf16 %v419_v48, %v415_v47  ;;  %v418_v56 = vld [vmem:[#allocation7 + $0x2f0] sm:$0xff]  ;;  %v425_v58 = vld [vmem:[#allocation7 + $0x328] sm:$0xff]  ;;  %v423_v59 = vld [vmem:[#allocation7 + $0x318] sm:$0xff] }
  0x97   :  { %1519 = vmatpush1.bf16.msra.mxu0 %v1518_v51  ;;  %1615 = vmatpush1.bf16.msra.mxu1 %v1614_v52  ;;  %v1540_v51 = vpack.c.bf16 %v417_v46, %v413_v45  ;;  %v412_v52 = vld [vmem:[#allocation7 + $0x2c0] sm:$0xff]  ;;  %v427_v60 = vld [vmem:[#allocation7 + $0x338] sm:$0xff]  ;;  %v1638_v62 = vpack.c.bf16 %v418_v56, %v414_v54  ;;  %v422_v4 = vld [vmem:[#allocation7 + $0x310] sm:$0xff]  ;;  %v156_v36 = vsub.s32 2, %v2185_v34 }
  0x98   :  { %1521 = vmatprep.subr.bf16.mxu0 %v1520_v53  ;;  %1617 = vmatprep.subr.bf16.mxu1 %v1616_v57  ;;  %v416_v53 = vld [vmem:[#allocation7 + $0x2e0] sm:$0xff]  ;;  %v421_v57 = vld [vmem:[#allocation7 + $0x308] sm:$0xff]  ;;  %v1640_v5 = vpack.c.bf16 %v427_v60, %v423_v59  ;;  %v426_v6 = vld [vmem:[#allocation7 + $0x330] sm:$0xff] }
  0x99   :  { %v1542_v61 = vpack.c.bf16 %v416_v53, %v412_v52  ;;  %v433_v8 = vld [vmem:[#allocation7 + $0x368] sm:$0xff]  ;;  %v431_v9 = vld [vmem:[#allocation7 + $0x358] sm:$0xff]  ;;  %v1642_v12 = vpack.c.bf16 %v426_v6, %v422_v4  ;;  %v430_v16 = vld [vmem:[#allocation7 + $0x350] sm:$0xff] }
  0x9a   :  { %v435_v10 = vld [vmem:[#allocation7 + $0x378] sm:$0xff]  ;;  %v434_v18 = vld [vmem:[#allocation7 + $0x370] sm:$0xff]  ;;  %v441_v20 = vld [vmem:[#allocation7 + $0x3a8] sm:$0xff] }
  0x9b   :  { %1523 = vmatpush1.bf16.msra.mxu0 %v1522_v63  ;;  %1619 = vmatpush1.bf16.msra.mxu1 %v1618_v2  ;;  %v1544_v63 = vpack.c.bf16 %v425_v58, %v421_v57  ;;  %v420_v2 = vld [vmem:[#allocation7 + $0x300] sm:$0xff]  ;;  %v1644_v17 = vpack.c.bf16 %v435_v10, %v431_v9  ;;  %v439_v21 = vld [vmem:[#allocation7 + $0x398] sm:$0xff]  ;;  %v1646_v24 = vpack.c.bf16 %v434_v18, %v430_v16  ;;  %v438_v29 = vld [vmem:[#allocation7 + $0x390] sm:$0xff]  ;;  %v2204_v9 = vand.u32 127, %v146_v33 }
  0x9c   :  { %1525 = vmatprep.subr.bf16.mxu0 %v1524_v3  ;;  %1621 = vmatprep.subr.bf16.mxu1 %v1620_v7  ;;  %v424_v3 = vld [vmem:[#allocation7 + $0x320] sm:$0xff]  ;;  %v429_v7 = vld [vmem:[#allocation7 + $0x348] sm:$0xff]  ;;  %v443_v22 = vld [vmem:[#allocation7 + $0x3b8] sm:$0xff] }
  0x9d   :  { %v1546_v11 = vpack.c.bf16 %v424_v3, %v420_v2  ;;  %v1648_v28 = vpack.c.bf16 %v443_v22, %v439_v21  ;;  %v442_v30 = vld [vmem:[#allocation7 + $0x3b0] sm:$0xff]  ;;  %v144_v35 = vld [vmem:[%s2283_s2] sm:$0x7]  ;;  %v448_v44 = vld [vmem:[#allocation7 + $0x3e0] sm:$0xff]  ;;  %s2020_s2 = smov 122   ;;  %vm317_vm2 = vcmp.lt.s32.totalorder %v2204_v9, 122 }
  0x9e   :  { %v1650_v32 = vpack.c.bf16 %v442_v30, %v438_v29  ;;  %v447_v40 = vld [vmem:[#allocation7 + $0x3d8] sm:$0xff]  ;;  %v446_v47 = vld [vmem:[#allocation7 + $0x3d0] sm:$0xff]  ;;  %v453_v53 = vld [vmem:[#allocation7 + $0x408] sm:$0xff]  ;;  %vm834_vm3 = vcmp.lt.s32.totalorder %v2204_v9, 112 }
  0x9f   :  { %1527 = vmatpush1.bf16.msra.mxu0 %v1526_v13  ;;  %1623 = vmatpush1.bf16.msra.mxu1 %v1622_v14  ;;  %v1548_v13 = vpack.c.bf16 %v433_v8, %v429_v7  ;;  %v428_v14 = vld [vmem:[#allocation7 + $0x340] sm:$0xff]  ;;  %v451_v42 = vld [vmem:[#allocation7 + $0x3f8] sm:$0xff]  ;;  %v450_v48 = vld [vmem:[#allocation7 + $0x3f0] sm:$0xff] }
  0xa0   :  { %1529 = vmatprep.subr.bf16.mxu0 %v1528_v15  ;;  %1625 = vmatprep.subr.bf16.mxu1 %v1624_v19  ;;  %v432_v15 = vld [vmem:[#allocation7 + $0x360] sm:$0xff]  ;;  %v437_v19 = vld [vmem:[#allocation7 + $0x388] sm:$0xff]  ;;  %v1652_v45 = vpack.c.bf16 %v451_v42, %v447_v40  ;;  %v459_v57 = vld [vmem:[#allocation7 + $0x438] sm:$0xff] }
  0xa1   :  { %v1550_v23 = vpack.c.bf16 %v432_v15, %v428_v14  ;;  %v457_v54 = vld [vmem:[#allocation7 + $0x428] sm:$0xff]  ;;  %v456_v14 = vld [vmem:[#allocation7 + $0x420] sm:$0xff]  ;;  %v454_v15 = vld [vmem:[#allocation7 + $0x410] sm:$0xff] }
  0xa2   :  { %v1560_v56 = vpack.c.bf16 %v457_v54, %v453_v53  ;;  %v458_v16 = vld [vmem:[#allocation7 + $0x430] sm:$0xff]  ;;  %v467_v21 = vld [vmem:[#allocation7 + $0x478] sm:$0xff] }
  0xa3   :  { %1531 = vmatpush1.bf16.msra.mxu0 %v1530_v25  ;;  %1627 = vmatpush1.bf16.msra.mxu1 %v1626_v26  ;;  %v1552_v25 = vpack.c.bf16 %v441_v20, %v437_v19  ;;  %v436_v26 = vld [vmem:[#allocation7 + $0x380] sm:$0xff]  ;;  %v465_v19 = vld [vmem:[#allocation7 + $0x468] sm:$0xff]  ;;  %v463_v20 = vld [vmem:[#allocation7 + $0x458] sm:$0xff] }
  0xa4   :  { %1533 = vmatprep.subr.bf16.mxu0 %v1532_v27  ;;  %1629 = vmatprep.subr.bf16.mxu1 %v1628_v31  ;;  %v440_v27 = vld [vmem:[#allocation7 + $0x3a0] sm:$0xff]  ;;  %v466_v33 = vld [vmem:[#allocation7 + $0x470] sm:$0xff]  ;;  %v475_v40 = vld [vmem:[#allocation7 + $0x4b8] sm:$0xff] }
  0xa5   :  { %v1554_v31 = vpack.c.bf16 %v440_v27, %v436_v26  ;;  %v1658_v26 = vpack.c.bf16 %v458_v16, %v454_v15  ;;  %v460_v27 = vld [vmem:[#allocation7 + $0x440] sm:$0xff]  ;;  %v483_v53 = vld [vmem:[#allocation7 + $0x4f8] sm:$0xff]  ;;  %v486_v15 = vld [vmem:[#allocation7 + $0x510] sm:$0xff] }
  0xa6   :  { %v490_v16 = vld [vmem:[#allocation7 + $0x530] sm:$0xff]  ;;  %v1058_v9 = vld [vmem:[#allocation10 + $0x18] sm:$0xff] }
  0xa7   :  { %1535 = vmatpush1.bf16.msra.mxu0 %v1534_v37  ;;  %1631 = vmatpush1.bf16.msra.mxu1 %v1630_v38  ;;  %v152_v37 = vsub.s32 1, %v2185_v34  ;;  %v445_v38 = vld [vmem:[#allocation7 + $0x3c8] sm:$0xff] }
  0xa8   :  { %1537 = vmatprep.subr.bf16.mxu0 %v1536_v39  ;;  %1633 = vmatprep.subr.bf16.mxu1 %v1632_v43  ;;  %v449_v39 = vld [vmem:[#allocation7 + $0x3e8] sm:$0xff]  ;;  %v444_v43 = vld [vmem:[#allocation7 + $0x3c0] sm:$0xff] }
  0xa9   :  { %v1556_v41 = vpack.c.bf16 %v449_v39, %v445_v38  ;;  %v1558_v46 = vpack.c.bf16 %v448_v44, %v444_v43  ;;  %v153_v52 = vrot.slane %v144_v35, %v152_v37  ;;  %v473_v38 = vld [vmem:[#allocation7 + $0x4a8] sm:$0xff]  ;;  %v471_v39 = vld [vmem:[#allocation7 + $0x498] sm:$0xff]  ;;  %v468_v43 = vld [vmem:[#allocation7 + $0x480] sm:$0xff] }
  0xaa   :  { %v472_v44 = vld [vmem:[#allocation7 + $0x4a0] sm:$0xff] }
  0xab   :  { %1539 = vmatpush1.bf16.msra.mxu0 %v1538_v49  ;;  %1635 = vmatpush1.bf16.msra.mxu1 %v1634_v50  ;;  %v157_v49 = vrot.slane %v144_v35, %v156_v36  ;;  %v1654_v50 = vpack.c.bf16 %v450_v48, %v446_v47  ;;  %v470_v47 = vld [vmem:[#allocation7 + $0x490] sm:$0xff]  ;;  %v1570_v54 = vpack.c.bf16 %v472_v44, %v468_v43 }
  0xac   :  { %1541 = vmatprep.subr.bf16.mxu0 %v1540_v51  ;;  %1637 = vmatprep.subr.bf16.mxu1 %v1636_v55  ;;  %v148_v51 = vsub.s32 0, %v2185_v34  ;;  %v455_v55 = vld [vmem:[#allocation7 + $0x418] sm:$0xff]  ;;  %v474_v48 = vld [vmem:[#allocation7 + $0x4b0] sm:$0xff] }
  0xad   :  { %v1656_v60 = vpack.c.bf16 %v459_v57, %v455_v55  ;;  %v1666_v55 = vpack.c.bf16 %v474_v48, %v470_v47  ;;  %v480_v57 = vld [vmem:[#allocation7 + $0x4e0] sm:$0xff]  ;;  %v502_v43 = vld [vmem:[#allocation7 + $0x590] sm:$0xff]  ;;  %v511_v47 = vld [vmem:[#allocation7 + $0x5d8] sm:$0xff] }
  0xae   :  { %v149_v2 = vrot.slane %v144_v35, %v148_v51  ;;  %v469_v35 = vld [vmem:[#allocation7 + $0x488] sm:$0xff]  ;;  %v506_v44 = vld [vmem:[#allocation7 + $0x5b0] sm:$0xff]  ;;  %v515_v48 = vld [vmem:[#allocation7 + $0x5f8] sm:$0xff] }
  0xaf   :  { %1543 = vmatpush1.bf16.msra.mxu0 %v1542_v61  ;;  %1639 = vmatpush1.bf16.msra.mxu1 %v1638_v62 }
  0xb0   :  { %1545 = vmatprep.subr.bf16.mxu0 %v1544_v63  ;;  %1641 = vmatprep.subr.bf16.mxu1 %v1640_v5 }
  0xb3   :  { %1547 = vmatpush1.bf16.msra.mxu0 %v1546_v11  ;;  %1643 = vmatpush1.bf16.msra.mxu1 %v1642_v12 }
  0xb4   :  { %1549 = vmatprep.subr.bf16.mxu0 %v1548_v13  ;;  %1645 = vmatprep.subr.bf16.mxu1 %v1644_v17  ;;  %v452_v13 = vld [vmem:[#allocation7 + $0x400] sm:$0xff]  ;;  %v461_v17 = vld [vmem:[#allocation7 + $0x448] sm:$0xff] }
  0xb5   :  { %v1564_v30 = vpack.c.bf16 %v465_v19, %v461_v17  ;;  %v493_v17 = vld [vmem:[#allocation7 + $0x548] sm:$0xff]  ;;  %v495_v19 = vld [vmem:[#allocation7 + $0x558] sm:$0xff] }
  0xb7   :  { %1551 = vmatpush1.bf16.msra.mxu0 %v1550_v23  ;;  %1647 = vmatpush1.bf16.msra.mxu1 %v1646_v24 }
  0xb8   :  { %1553 = vmatprep.subr.bf16.mxu0 %v1552_v25  ;;  %1649 = vmatprep.subr.bf16.mxu1 %v1648_v28  ;;  %v1562_v25 = vpack.c.bf16 %v456_v14, %v452_v13  ;;  %v464_v28 = vld [vmem:[#allocation7 + $0x460] sm:$0xff] }
  0xbb   :  { %1555 = vmatpush1.bf16.msra.mxu0 %v1554_v31  ;;  %1651 = vmatpush1.bf16.msra.mxu1 %v1650_v32  ;;  %v1660_v31 = vpack.c.bf16 %v467_v21, %v463_v20  ;;  %v462_v32 = vld [vmem:[#allocation7 + $0x450] sm:$0xff]  ;;  %v499_v20 = vld [vmem:[#allocation7 + $0x578] sm:$0xff] }
  0xbc   :  { %1557 = vmatprep.subr.bf16.mxu0 %v1556_v41  ;;  %1653 = vmatprep.subr.bf16.mxu1 %v1652_v45  ;;  %v1566_v41 = vpack.c.bf16 %v464_v28, %v460_v27  ;;  %v1662_v42 = vpack.c.bf16 %v466_v33, %v462_v32  ;;  %v1568_v45 = vpack.c.bf16 %v473_v38, %v469_v35  ;;  %v494_v28 = vld [vmem:[#allocation7 + $0x550] sm:$0xff]  ;;  %v503_v32 = vld [vmem:[#allocation7 + $0x598] sm:$0xff] }
  0xbd   :  { %v1676_v27 = vpack.c.bf16 %v499_v20, %v495_v19  ;;  %v507_v33 = vld [vmem:[#allocation7 + $0x5b8] sm:$0xff]  ;;  %v877_v20 = vld [vmem:[#allocation8 + $0x110] sm:$0xff] }
  0xbe   :  { %v894_v19 = vld [vmem:[#allocation8 + $0x198] sm:$0xff] }
  0xbf   :  { %1559 = vmatpush1.bf16.msra.mxu0 %v1558_v46  ;;  %1655 = vmatpush1.bf16.msra.mxu1 %v1654_v50  ;;  %v1664_v46 = vpack.c.bf16 %v475_v40, %v471_v39  ;;  %v481_v50 = vld [vmem:[#allocation7 + $0x4e8] sm:$0xff]  ;;  %v500_v39 = vld [vmem:[#allocation7 + $0x580] sm:$0xff] }
  0xc0   :  { %1561 = vmatprep.subr.bf16.mxu0 %v1560_v56  ;;  %1657 = vmatprep.subr.bf16.mxu1 %v1656_v60  ;;  %v476_v56 = vld [vmem:[#allocation7 + $0x4c0] sm:$0xff]  ;;  %v478_v60 = vld [vmem:[#allocation7 + $0x4d0] sm:$0xff] }
  0xc1   :  { %v504_v40 = vld [vmem:[#allocation7 + $0x5a0] sm:$0xff] }
 0x155   :  { %v231_v58 = vpop.f32.mrb[0].mxu0  ;;  %v302_v59 = vpop.f32.mrb[0].mxu1 }
 0x156   :  { %v2197_v61 = vadd.f32 %v302_v59, %v157_v49  ;;  %v233_v62 = vpop.f32.mrb[1].mxu0  ;;  %v1397_v63 = vpop.f32.mrb[1].mxu1  ;;  %v232_v6 = vadd.f32 %v231_v58, %v149_v2  ;;  %v477_v49 = vld [vmem:[#allocation7 + $0x4c8] sm:$0xff] }
 0x157   :  { %v234_v3 = vadd.f32 %v233_v62, %v153_v52  ;;  %v479_v52 = vld [vmem:[#allocation7 + $0x4d8] sm:$0xff]  ;;  %v1572_v58 = vpack.c.bf16 %v481_v50, %v477_v49  ;;  %v482_v62 = vld [vmem:[#allocation7 + $0x4f0] sm:$0xff]  ;;  %v485_v63 = vld [vmem:[#allocation7 + $0x508] sm:$0xff]  ;;  %v1586_v49 = vpack.c.bf16 %v504_v40, %v500_v39  ;;  %v1682_v50 = vpack.c.bf16 %v506_v44, %v502_v43 }
 0x158   :  { %v308_v4 = vmax.f32 %v2197_v61, 0.0  ;;  %v306_v8 = vmax.f32 %v232_v6, 0.0  ;;  %v1668_v59 = vpack.c.bf16 %v483_v53, %v479_v52  ;;  %v489_v2 = vld [vmem:[#allocation7 + $0x528] sm:$0xff]  ;;  %v1574_v6 = vpack.c.bf16 %v480_v57, %v476_v56  ;;  %v508_v52 = vld [vmem:[#allocation7 + $0x5c0] sm:$0xff]  ;;  %v510_v56 = vld [vmem:[#allocation7 + $0x5d0] sm:$0xff] }
 0x159   :  { %v307_v5 = vmax.f32 %v234_v3, 0.0  ;;  %v487_v3 = vld [vmem:[#allocation7 + $0x518] sm:$0xff]  ;;  %v1576_v13 = vpack.c.bf16 %v489_v2, %v485_v63  ;;  %v514_v57 = vld [vmem:[#allocation7 + $0x5f0] sm:$0xff]  ;;  %v859_v63 = vld [vmem:[#allocation8 + $0x80] sm:$0xff] }
 0x15a   :  { %v860_v2 = vld [vmem:[#allocation8 + $0x88] sm:$0xff]  ;;  %v846_v61 = vld [vmem:[#allocation8 + $0x18] sm:$0xff]  ;;  %v865_v39 = vld [vmem:[#allocation8 + $0xb0] sm:$0xff] }
 0x15b   :  { %v1826_v7 = vpack.i.bf16 %v308_v4, %v307_v5  ;;  %v866_v40 = vld [vmem:[#allocation8 + $0xb8] sm:$0xff] }
 0x15c   :  { %v1700_v43 = vpack.c.bf16 %v866_v40, %v865_v39  ;;  %v850_v44 = vld [vmem:[#allocation8 + $0x38] sm:$0xff]  ;;  %v857_v40 = vld [vmem:[#allocation8 + $0x70] sm:$0xff] }
 0x15d   :  { %1827 = vrot.lane.b32.xlu0 %v1826_v7, %s2020_s2  ;;  %v1670_v7 = vpack.c.bf16 %v482_v62, %v478_v60 }
 0x161   :  { %309 = vrot.lane.b32.xlu0 %v306_v8, %s2020_s2 }
 0x1cf   :  { %v2206_v10 = vpop.permute.xlu0 %1827 }
 0x1d0   :  { %v1830_v11 = vunpack.i.h.bf16 %v2206_v10  ;;  %v1829_v12 = vunpack.i.l.bf16 %v2206_v10  ;;  %v875_v10 = vld [vmem:[#allocation8 + $0x100] sm:$0xff] }
 0x1d2   :  { %v318_v18 = vsel %vm317_vm2, %v1829_v12, %v1830_v11 }
 0x1d3   :  { %v2215_v22 = vpop.permute.xlu0 %309  ;;  %v322_v23 = vmax.f32 %v307_v5, %v318_v18  ;;  %v491_v5 = vld [vmem:[#allocation7 + $0x538] sm:$0xff]  ;;  %v497_v18 = vld [vmem:[#allocation7 + $0x568] sm:$0xff] }
 0x1d4   :  { %v319_v24 = vsel %vm317_vm2, %v2215_v22, %v1829_v12  ;;  %v488_v12 = vld [vmem:[#allocation7 + $0x520] sm:$0xff]  ;;  %v1672_v14 = vpack.c.bf16 %v491_v5, %v487_v3  ;;  %v320_v60 = vsel %vm317_vm2, %v1830_v11, %v2215_v22  ;;  %v1688_v5 = vpack.c.bf16 %v860_v2, %v859_v63  ;;  %v862_v22 = vld [vmem:[#allocation8 + $0x98] sm:$0xff]  ;;  %v884_v63 = vld [vmem:[#allocation8 + $0x148] sm:$0xff] }
 0x1d5   :  { %v321_v29 = vmax.f32 %v306_v8, %v319_v24  ;;  %602 = vmatprep.mubr.f32.mxu0 %v322_v23  ;;  %744 = vmatprep.mubr.f32.mxu1 %v322_v23  ;;  %v484_v8 = vld [vmem:[#allocation7 + $0x500] sm:$0xff]  ;;  %v1674_v23 = vpack.c.bf16 %v490_v16, %v486_v15  ;;  %v323_v62 = vmax.f32 %v308_v4, %v320_v60  ;;  %v861_v15 = vld [vmem:[#allocation8 + $0x90] sm:$0xff] }
 0x1d6   :  { %v1578_v21 = vpack.c.bf16 %v488_v12, %v484_v8  ;;  %v492_v24 = vld [vmem:[#allocation7 + $0x540] sm:$0xff]  ;;  %v892_v8 = vld [vmem:[#allocation8 + $0x188] sm:$0xff]  ;;  %v845_v16 = vld [vmem:[#allocation8 + $0x10] sm:$0xff]  ;;  %v1692_v4 = vpack.c.bf16 %v862_v22, %v861_v15 }
 0x1d7   :  { %603 = vmatmul.mubr.f32.vlgmr.msra.gmra.mrb[2].mxu0 %v321_v29  ;;  %745 = vmatmul.mubr.f32.vlgmr.msra.gmra.mrb[2].mxu1 %v321_v29  ;;  %v498_v29 = vld [vmem:[#allocation7 + $0x570] sm:$0xff]  ;;  %v843_v3 = vld [vmem:[#allocation8] sm:$0xff] }
 0x1d8   :  { %1563 = vmatpush1.bf16.msra.mxu0 %v1562_v25  ;;  %1659 = vmatpush1.bf16.msra.mxu1 %v1658_v26  ;;  %v496_v25 = vld [vmem:[#allocation7 + $0x560] sm:$0xff]  ;;  %v1580_v26 = vpack.c.bf16 %v497_v18, %v493_v17  ;;  %v1678_v38 = vpack.c.bf16 %v498_v29, %v494_v28  ;;  %v1694_v17 = vpack.c.bf16 %v846_v61, %v845_v16  ;;  %v893_v18 = vld [vmem:[#allocation8 + $0x190] sm:$0xff]  ;;  %v848_v29 = vld [vmem:[#allocation8 + $0x28] sm:$0xff] }
 0x1d9   :  { %1565 = vmatprep.subr.bf16.mxu0 %v1564_v30  ;;  %1661 = vmatprep.subr.bf16.mxu1 %v1660_v31  ;;  %v501_v30 = vld [vmem:[#allocation7 + $0x588] sm:$0xff]  ;;  %v1582_v35 = vpack.c.bf16 %v496_v25, %v492_v24  ;;  %v863_v24 = vld [vmem:[#allocation8 + $0xa0] sm:$0xff]  ;;  %v869_v2 = vld [vmem:[#allocation8 + $0xd0] sm:$0xff] }
 0x1da   :  { %673 = vmatprep.mubr.f32.mxu0 %v2018_v1  ;;  %815 = vmatprep.mubr.f32.mxu1 %v2018_v1  ;;  %v505_v31 = vld [vmem:[#allocation7 + $0x5a8] sm:$0xff]  ;;  %v847_v28 = vld [vmem:[#allocation8 + $0x20] sm:$0xff]  ;;  %v885_v15 = vld [vmem:[#allocation8 + $0x150] sm:$0xff] }
 0x1db   :  { %v864_v25 = vld [vmem:[#allocation8 + $0xa8] sm:$0xff]  ;;  %v883_v60 = vld [vmem:[#allocation8 + $0x140] sm:$0xff]  ;;  %v516_v61 = vld [vmem:[%s2285_s4] sm:$0xf]  ;;  %s2021_s4 = smov 112  }
 0x1dc   :  { %1567 = vmatpush1.bf16.msra.mxu0 %v1566_v41  ;;  %1663 = vmatpush1.bf16.msra.mxu1 %v1662_v42  ;;  %v1584_v41 = vpack.c.bf16 %v505_v31, %v501_v30  ;;  %v1680_v42 = vpack.c.bf16 %v507_v33, %v503_v32  ;;  %v895_v30 = vld [vmem:[#allocation8 + $0x1a0] sm:$0xff]  ;;  %v896_v31 = vld [vmem:[#allocation8 + $0x1a8] sm:$0xff] }
 0x1dd   :  { %1569 = vmatprep.subr.bf16.mxu0 %v1568_v45  ;;  %1665 = vmatprep.subr.bf16.mxu1 %v1664_v46  ;;  %v509_v45 = vld [vmem:[#allocation7 + $0x5c8] sm:$0xff]  ;;  %v879_v32 = vld [vmem:[#allocation8 + $0x120] sm:$0xff] }
 0x1de   :  { %v513_v46 = vld [vmem:[#allocation7 + $0x5e8] sm:$0xff] }
 0x1df   :  { %v1588_v53 = vpack.c.bf16 %v513_v46, %v509_v45  ;;  %v880_v33 = vld [vmem:[#allocation8 + $0x128] sm:$0xff]  ;;  %v897_v45 = vld [vmem:[#allocation8 + $0x1b0] sm:$0xff]  ;;  %v898_v46 = vld [vmem:[#allocation8 + $0x1b8] sm:$0xff] }
 0x1e0   :  { %1571 = vmatpush1.bf16.msra.mxu0 %v1570_v54  ;;  %1667 = vmatpush1.bf16.msra.mxu1 %v1666_v55  ;;  %v1684_v54 = vpack.c.bf16 %v515_v48, %v511_v47  ;;  %v512_v55 = vld [vmem:[#allocation7 + $0x5e0] sm:$0xff]  ;;  %v1732_v47 = vpack.c.bf16 %v898_v46, %v897_v45  ;;  %v881_v48 = vld [vmem:[#allocation8 + $0x130] sm:$0xff] }
 0x1e1   :  { %1573 = vmatprep.subr.bf16.mxu0 %v1572_v58  ;;  %1669 = vmatprep.subr.bf16.mxu1 %v1668_v59  ;;  %v1590_v58 = vpack.c.bf16 %v512_v55, %v508_v52  ;;  %v1686_v59 = vpack.c.bf16 %v514_v57, %v510_v56  ;;  %v868_v52 = vld [vmem:[#allocation8 + $0xc8] sm:$0xff]  ;;  %v889_v45 = vld [vmem:[#allocation8 + $0x170] sm:$0xff] }
 0x1e2   :  { %v900_v55 = vld [vmem:[#allocation8 + $0x1c8] sm:$0xff] }
 0x1e4   :  { %1575 = vmatpush1.bf16.msra.mxu0 %v1574_v6  ;;  %1671 = vmatpush1.bf16.msra.mxu1 %v1670_v7  ;;  %v844_v6 = vld [vmem:[#allocation8 + $0x8] sm:$0xff]  ;;  %v891_v7 = vld [vmem:[#allocation8 + $0x180] sm:$0xff] }
 0x1e5   :  { %1577 = vmatprep.subr.bf16.mxu0 %v1576_v13  ;;  %1673 = vmatprep.subr.bf16.mxu1 %v1672_v14  ;;  %v1690_v12 = vpack.c.bf16 %v844_v6, %v843_v3  ;;  %v1720_v13 = vpack.c.bf16 %v892_v8, %v891_v7  ;;  %v876_v14 = vld [vmem:[#allocation8 + $0x108] sm:$0xff]  ;;  %v870_v3 = vld [vmem:[#allocation8 + $0xd8] sm:$0xff]  ;;  %v1738_v8 = vpack.c.bf16 %v884_v63, %v883_v60 }
 0x1e6   :  { %v1722_v11 = vpack.c.bf16 %v876_v14, %v875_v10  ;;  %v902_v6 = vld [vmem:[#allocation8 + $0x1d8] sm:$0xff] }
 0x1e7   :  { %v854_v10 = vld [vmem:[#allocation8 + $0x58] sm:$0xff] }
 0x1e8   :  { %1579 = vmatpush1.bf16.msra.mxu0 %v1578_v21  ;;  %1675 = vmatpush1.bf16.msra.mxu1 %v1674_v23  ;;  %v1724_v21 = vpack.c.bf16 %v894_v19, %v893_v18  ;;  %v878_v23 = vld [vmem:[#allocation8 + $0x118] sm:$0xff]  ;;  %v532_v18 = vsub.s32 3, %v2185_v34 }
 0x1e9   :  { %1581 = vmatprep.subr.bf16.mxu0 %v1580_v26  ;;  %1677 = vmatprep.subr.bf16.mxu1 %v1676_v27  ;;  %v1726_v26 = vpack.c.bf16 %v878_v23, %v877_v20  ;;  %v1696_v27 = vpack.c.bf16 %v864_v25, %v863_v24  ;;  %v855_v20 = vld [vmem:[#allocation8 + $0x60] sm:$0xff]  ;;  %v904_v25 = vld [vmem:[#allocation8 + $0x1e8] sm:$0xff] }
 0x1ea   :  { %v903_v23 = vld [vmem:[#allocation8 + $0x1e0] sm:$0xff] }
 0x1ec   :  { %1583 = vmatpush1.bf16.msra.mxu0 %v1582_v35  ;;  %1679 = vmatpush1.bf16.msra.mxu1 %v1678_v38  ;;  %v1698_v35 = vpack.c.bf16 %v848_v29, %v847_v28  ;;  %v1728_v38 = vpack.c.bf16 %v896_v31, %v895_v30  ;;  %v1744_v28 = vpack.c.bf16 %v904_v25, %v903_v23  ;;  %v873_v31 = vld [vmem:[#allocation8 + $0xf0] sm:$0xff]  ;;  %v1064_v25 = vld [vmem:[#allocation10 + $0x48] sm:$0xff] }
 0x1ed   :  { %1585 = vmatprep.subr.bf16.mxu0 %v1584_v41  ;;  %1681 = vmatprep.subr.bf16.mxu1 %v1680_v42  ;;  %v849_v41 = vld [vmem:[#allocation8 + $0x30] sm:$0xff]  ;;  %v1730_v42 = vpack.c.bf16 %v880_v33, %v879_v32  ;;  %v529_v30 = vrot.slane %v516_v61, %v156_v36  ;;  %v874_v32 = vld [vmem:[#allocation8 + $0xf8] sm:$0xff]  ;;  %v521_v33 = vrot.slane %v516_v61, %v148_v51 }
 0x1ee   :  { %v1716_v39 = vpack.c.bf16 %v874_v32, %v873_v31  ;;  %v890_v36 = vld [vmem:[#allocation8 + $0x178] sm:$0xff]  ;;  %v1069_v32 = vld [vmem:[#allocation10 + $0x70] sm:$0xff] }
 0x1f0   :  { %1587 = vmatpush1.bf16.msra.mxu0 %v1586_v49  ;;  %1683 = vmatpush1.bf16.msra.mxu1 %v1682_v50  ;;  %v882_v49 = vld [vmem:[#allocation8 + $0x138] sm:$0xff]  ;;  %v867_v50 = vld [vmem:[#allocation8 + $0xc0] sm:$0xff] }
 0x1f1   :  { %1589 = vmatprep.subr.bf16.mxu0 %v1588_v53  ;;  %1685 = vmatprep.subr.bf16.mxu1 %v1684_v54  ;;  %v1702_v53 = vpack.c.bf16 %v850_v44, %v849_v41  ;;  %v899_v54 = vld [vmem:[#allocation8 + $0x1c0] sm:$0xff]  ;;  %v1734_v56 = vpack.c.bf16 %v882_v49, %v881_v48  ;;  %v1704_v57 = vpack.c.bf16 %v868_v52, %v867_v50  ;;  %v858_v41 = vld [vmem:[#allocation8 + $0x78] sm:$0xff] }
 0x1f2   :  { %v906_v44 = vld [vmem:[#allocation8 + $0x1f8] sm:$0xff]  ;;  %v1750_v49 = vpack.c.bf16 %v890_v36, %v889_v45  ;;  %v1154_v45 = vld [vmem:[#allocation11 + $0x28] sm:$0xff] }
 0x1f4   :  { %1591 = vmatpush1.bf16.msra.mxu0 %v1590_v58  ;;  %1687 = vmatpush1.bf16.msra.mxu1 %v1686_v59  ;;  %v851_v58 = vld [vmem:[#allocation8 + $0x40] sm:$0xff]  ;;  %v852_v59 = vld [vmem:[#allocation8 + $0x48] sm:$0xff] }
 0x1f5   :  { %1689 = vmatprep.subr.bf16.mxu0 %v1688_v5  ;;  %1721 = vmatprep.subr.bf16.mxu1 %v1720_v13  ;;  %v901_v5 = vld [vmem:[#allocation8 + $0x1d0] sm:$0xff]  ;;  %v1706_v7 = vpack.c.bf16 %v852_v59, %v851_v58 }
 0x1f6   :  { %v853_v13 = vld [vmem:[#allocation8 + $0x50] sm:$0xff]  ;;  %v1740_v14 = vpack.c.bf16 %v902_v6, %v901_v5  ;;  %v1055_v6 = vld [vmem:[#allocation10] sm:$0xff] }
 0x1f7   :  { %674 = vmatmul.mubr.f32.vlgmr.msra.gmra.mrb[2].mxu0 %v323_v62  ;;  %816 = vmatmul.mubr.f32.vlgmr.msra.gmra.mrb[2].mxu1 %v323_v62  ;;  %v1736_v62 = vpack.c.bf16 %v900_v55, %v899_v54  ;;  %v1710_v22 = vpack.c.bf16 %v854_v10, %v853_v13 }
 0x1f8   :  { %1691 = vmatpush3.bf16.msra.mxu0 %v1690_v12  ;;  %1723 = vmatpush3.bf16.msra.mxu1 %v1722_v11  ;;  %v1708_v12 = vpack.c.bf16 %v870_v3, %v869_v2  ;;  %v886_v11 = vld [vmem:[#allocation8 + $0x158] sm:$0xff] }
 0x1f9   :  { %1693 = vmatprep.subr.bf16.mxu0 %v1692_v4  ;;  %1725 = vmatprep.subr.bf16.mxu1 %v1724_v21  ;;  %v1742_v16 = vpack.c.bf16 %v886_v11, %v885_v15  ;;  %v871_v4 = vld [vmem:[#allocation8 + $0xe0] sm:$0xff]  ;;  %v856_v21 = vld [vmem:[#allocation8 + $0x68] sm:$0xff] }
 0x1fa   :  { %v1714_v24 = vpack.c.bf16 %v856_v21, %v855_v20  ;;  %v1061_v20 = vld [vmem:[#allocation10 + $0x30] sm:$0xff]  ;;  %v1062_v21 = vld [vmem:[#allocation10 + $0x38] sm:$0xff] }
 0x1fb   :  { %v1762_v23 = vpack.c.bf16 %v1062_v21, %v1061_v20 }
 0x1fc   :  { %1695 = vmatpush3.bf16.msra.mxu0 %v1694_v17  ;;  %1727 = vmatpush3.bf16.msra.mxu1 %v1726_v26  ;;  %v872_v17 = vld [vmem:[#allocation8 + $0xe8] sm:$0xff]  ;;  %v887_v26 = vld [vmem:[#allocation8 + $0x160] sm:$0xff] }
 0x1fd   :  { %1697 = vmatprep.subr.bf16.mxu0 %v1696_v27  ;;  %1729 = vmatprep.subr.bf16.mxu1 %v1728_v38  ;;  %v1712_v19 = vpack.c.bf16 %v872_v17, %v871_v4  ;;  %v888_v27 = vld [vmem:[#allocation8 + $0x168] sm:$0xff]  ;;  %v533_v38 = vrot.slane %v516_v61, %v532_v18  ;;  %v1059_v17 = vld [vmem:[#allocation10 + $0x20] sm:$0xff] }
 0x1fe   :  { %v1746_v29 = vpack.c.bf16 %v888_v27, %v887_v26  ;;  %v1060_v18 = vld [vmem:[#allocation10 + $0x28] sm:$0xff]  ;;  %v1065_v27 = vld [vmem:[#allocation10 + $0x50] sm:$0xff] }
 0x200   :  { %1699 = vmatpush3.bf16.msra.mxu0 %v1698_v35  ;;  %1731 = vmatpush3.bf16.msra.mxu1 %v1730_v42  ;;  %v525_v35 = vrot.slane %v516_v61, %v152_v37  ;;  %v905_v42 = vld [vmem:[#allocation8 + $0x1f0] sm:$0xff] }
 0x201   :  { %1701 = vmatprep.subr.bf16.mxu0 %v1700_v43  ;;  %1733 = vmatprep.subr.bf16.mxu1 %v1732_v47  ;;  %v1718_v43 = vpack.c.bf16 %v858_v41, %v857_v40  ;;  %v1748_v48 = vpack.c.bf16 %v906_v44, %v905_v42  ;;  %v1057_v61 = vld [vmem:[#allocation10 + $0x10] sm:$0xff]  ;;  %v1152_v42 = vld [vmem:[#allocation11 + $0x18] sm:$0xff]  ;;  %v1153_v44 = vld [vmem:[#allocation11 + $0x20] sm:$0xff] }
 0x202   :  { %v1756_v4 = vpack.c.bf16 %v1058_v9, %v1057_v61  ;;  %v1151_v40 = vld [vmem:[#allocation11 + $0x10] sm:$0xff]  ;;  %v1783_v36 = vpack.c.bf16 %v1154_v45, %v1153_v44 }
 0x204   :  { %1703 = vmatpush3.bf16.msra.mxu0 %v1702_v53  ;;  %1735 = vmatpush3.bf16.msra.mxu1 %v1734_v56 }
 0x205   :  { %1705 = vmatprep.subr.bf16.mxu0 %v1704_v57  ;;  %1737 = vmatprep.subr.bf16.mxu1 %v1736_v62 }
 0x208   :  { %1707 = vmatpush3.bf16.msra.mxu0 %v1706_v7  ;;  %1739 = vmatpush3.bf16.msra.mxu1 %v1738_v8  ;;  %v1056_v7 = vld [vmem:[#allocation10 + $0x8] sm:$0xff] }
 0x209   :  { %1709 = vmatprep.subr.bf16.mxu0 %v1708_v12  ;;  %1741 = vmatprep.subr.bf16.mxu1 %v1740_v14  ;;  %v1753_v15 = vpack.c.bf16 %v1056_v7, %v1055_v6  ;;  %v1163_v6 = vld [vmem:[#allocation11 + $0x70] sm:$0xff]  ;;  %v1164_v7 = vld [vmem:[#allocation11 + $0x78] sm:$0xff] }
 0x20c   :  { %1711 = vmatpush3.bf16.msra.mxu0 %v1710_v22  ;;  %1743 = vmatpush3.bf16.msra.mxu1 %v1742_v16 }
 0x20d   :  { %1713 = vmatprep.subr.bf16.mxu0 %v1712_v19  ;;  %1745 = vmatprep.subr.bf16.mxu1 %v1744_v28  ;;  %v1759_v19 = vpack.c.bf16 %v1060_v18, %v1059_v17  ;;  %v1066_v28 = vld [vmem:[#allocation10 + $0x58] sm:$0xff] }
 0x210   :  { %1715 = vmatpush3.bf16.msra.mxu0 %v1714_v24  ;;  %1747 = vmatpush3.bf16.msra.mxu1 %v1746_v29  ;;  %v1063_v24 = vld [vmem:[#allocation10 + $0x40] sm:$0xff] }
 0x211   :  { %1717 = vmatprep.subr.bf16.mxu0 %v1716_v39  ;;  %1749 = vmatprep.subr.bf16.mxu1 %v1748_v48  ;;  %v1765_v26 = vpack.c.bf16 %v1064_v25, %v1063_v24  ;;  %v1067_v29 = vld [vmem:[#allocation10 + $0x60] sm:$0xff]  ;;  %v1150_v39 = vld [vmem:[#allocation11 + $0x8] sm:$0xff] }
 0x214   :  { %1719 = vmatpush3.bf16.msra.mxu0 %v1718_v43  ;;  %1751 = vmatpush3.bf16.msra.mxu1 %v1750_v49  ;;  %v1780_v43 = vpack.c.bf16 %v1152_v42, %v1151_v40  ;;  %v1157_v49 = vld [vmem:[#allocation11 + $0x40] sm:$0xff] }
 0x215   :  { %1752 = vmatprep.subr.bf16.mxu0 %v2017_v0  ;;  %1776 = vmatprep.subr.bf16.mxu1 %v2017_v0 }
 0x2ca   :  { %v675_v46 = vpop.f32.mrb[2].mxu0  ;;  %v817_v47 = vpop.f32.mrb[2].mxu1 }
 0x2cb   :  { %v1802_v51 = vadd.f32 %v817_v47, %v529_v30  ;;  %v677_v50 = vpop.f32.mrb[3].mxu0  ;;  %v819_v34 = vpop.f32.mrb[3].mxu1  ;;  %v1800_v37 = vadd.f32 %v675_v46, %v521_v33  ;;  %v1068_v30 = vld [vmem:[#allocation10 + $0x68] sm:$0xff]  ;;  %v1070_v33 = vld [vmem:[#allocation10 + $0x78] sm:$0xff]  ;;  %v1155_v46 = vld [vmem:[#allocation11 + $0x30] sm:$0xff] }
 0x2cc   :  { %v1801_v52 = vadd.f32 %v677_v50, %v525_v35  ;;  %v1803_v53 = vadd.f32 %v819_v34, %v533_v38  ;;  %v1771_v31 = vpack.c.bf16 %v1068_v30, %v1067_v29  ;;  %v1774_v35 = vpack.c.bf16 %v1070_v33, %v1069_v32  ;;  %v1149_v38 = vld [vmem:[#allocation11] sm:$0xff]  ;;  %v1156_v47 = vld [vmem:[#allocation11 + $0x38] sm:$0xff]  ;;  %v1159_v34 = vld [vmem:[#allocation11 + $0x50] sm:$0xff] }
 0x2cd   :  { %v824_v54 = vmax.f32 %v1802_v51, 0.0  ;;  %v822_v56 = vmax.f32 %v1800_v37, 0.0  ;;  %v1777_v41 = vpack.c.bf16 %v1150_v39, %v1149_v38  ;;  %v1786_v48 = vpack.c.bf16 %v1156_v47, %v1155_v46  ;;  %v1158_v51 = vld [vmem:[#allocation11 + $0x48] sm:$0xff]  ;;  %v1160_v37 = vld [vmem:[#allocation11 + $0x58] sm:$0xff] }
 0x2ce   :  { %v823_v55 = vmax.f32 %v1801_v52, 0.0  ;;  %v825_v57 = vmax.f32 %v1803_v53, 0.0  ;;  %v1789_v50 = vpack.c.bf16 %v1158_v51, %v1157_v49  ;;  %v1792_v52 = vpack.c.bf16 %v1160_v37, %v1159_v34  ;;  %v1161_v53 = vld [vmem:[#allocation11 + $0x60] sm:$0xff] }
 0x2d0   :  { %v1831_v58 = vpack.i.bf16 %v824_v54, %v823_v55  ;;  %v1836_v59 = vpack.i.bf16 %v825_v57, %v822_v56 }
 0x2d2   :  { %1832 = vrot.lane.b32.xlu1 %v1831_v58, %s2021_s4 }
 0x2d6   :  { %1837 = vrot.lane.b32.xlu1 %v1836_v59, %s2021_s4 }
 0x344   :  { %v1833_v60 = vpop.permute.xlu1 %1832 }
 0x345   :  { %v1835_v62 = vunpack.i.h.bf16 %v1833_v60  ;;  %v1834_v63 = vunpack.i.l.bf16 %v1833_v60 }
 0x347   :  { %v836_v2 = vsel %vm834_vm3, %v1834_v63, %v1835_v62 }
 0x348   :  { %v1838_v3 = vpop.permute.xlu1 %1837  ;;  %v840_v5 = vmax.f32 %v823_v55, %v836_v2 }
 0x349   :  { %v1840_v8 = vunpack.i.h.bf16 %v1838_v3  ;;  %v1839_v12 = vunpack.i.l.bf16 %v1838_v3 }
 0x34a   :  { %978 = vmatprep.mubr.f32.mxu0 %v840_v5 }
 0x34b   :  { %v835_v13 = vsel %vm834_vm3, %v1835_v62, %v1840_v8  ;;  %v837_v10 = vsel %vm834_vm3, %v1839_v12, %v1834_v63  ;;  %v838_v14 = vsel %vm834_vm3, %v1840_v8, %v1839_v12  ;;  %v1798_v8 = vpack.c.bf16 %v1164_v7, %v1163_v6 }
 0x34c   :  { %v841_v11 = vmax.f32 %v824_v54, %v835_v13  ;;  %v839_v22 = vmax.f32 %v822_v56, %v837_v10  ;;  %v842_v16 = vmax.f32 %v825_v57, %v838_v14  ;;  %v1162_v54 = vld [vmem:[#allocation11 + $0x68] sm:$0xff]  ;;  %v1263_v57 = vld [vmem:[%s2287_s6] ss:$0 sm:$0xff] }
 0x34d   :  { %v1795_v55 = vpack.c.bf16 %v1162_v54, %v1161_v53 }
 0x34e   :  { %979 = vmatmul.mubr.f32.vlgmr.msra.gmra.mrb[4].mxu0 %v839_v22  ;;  %1048 = vmatprep.mubr.f32.mxu1 %v842_v16 }
 0x34f   :  { %1049 = vmatmul.mubr.f32.vlgmr.msra.gmra.mrb[4].mxu1 %v841_v11  ;;  %1754 = vmatpush3.bf16.msra.mxu0 %v1753_v15  ;;  %v1265_v15 = vld [vmem:[%s2291_s10] ss:$0 sm:$0xff] }
 0x350   :  { %1755 = vmatprep.subr.bf16.mxu0 %v2017_v0  ;;  %1430 = vmatprep.mubr.msk.f32.mxu0 %vm2019_vm0, %v2018_v1 }
 0x351   :  { %1465 = vmatprep.mubr.msk.f32.mxu1 %vm2019_vm0, %v2018_v1  ;;  %v1768_v1 = vpack.c.bf16 %v1066_v28, %v1065_v27  ;;  %1778 = vmatpush3.bf16.msra.mxu1 %v1777_v41 }
 0x352   :  { %1779 = vmatprep.subr.bf16.mxu1 %v2017_v0 }
 0x353   :  { %1757 = vmatpush3.bf16.msra.mxu0 %v1756_v4 }
 0x354   :  { %1758 = vmatprep.subr.bf16.mxu0 %v2017_v0 }
 0x355   :  { %1781 = vmatpush3.bf16.msra.mxu1 %v1780_v43 }
 0x356   :  { %1782 = vmatprep.subr.bf16.mxu1 %v2017_v0 }
 0x357   :  { %1760 = vmatpush3.bf16.msra.mxu0 %v1759_v19 }
 0x358   :  { %1761 = vmatprep.subr.bf16.mxu0 %v2017_v0 }
 0x359   :  { %1784 = vmatpush3.bf16.msra.mxu1 %v1783_v36 }
 0x35a   :  { %1785 = vmatprep.subr.bf16.mxu1 %v2017_v0 }
 0x35b   :  { %1763 = vmatpush3.bf16.msra.mxu0 %v1762_v23 }
 0x35c   :  { %1764 = vmatprep.subr.bf16.mxu0 %v2017_v0 }
 0x35d   :  { %1787 = vmatpush3.bf16.msra.mxu1 %v1786_v48 }
 0x35e   :  { %1788 = vmatprep.subr.bf16.mxu1 %v2017_v0 }
 0x35f   :  { %1766 = vmatpush3.bf16.msra.mxu0 %v1765_v26 }
 0x360   :  { %1767 = vmatprep.subr.bf16.mxu0 %v2017_v0 }
 0x361   :  { %1790 = vmatpush3.bf16.msra.mxu1 %v1789_v50 }
 0x362   :  { %1791 = vmatprep.subr.bf16.mxu1 %v2017_v0 }
 0x363   :  { %1769 = vmatpush3.bf16.msra.mxu0 %v1768_v1 }
 0x364   :  { %1770 = vmatprep.subr.bf16.mxu0 %v2017_v0 }
 0x365   :  { %1793 = vmatpush3.bf16.msra.mxu1 %v1792_v52 }
 0x366   :  { %1794 = vmatprep.subr.bf16.mxu1 %v2017_v0 }
 0x367   :  { %1772 = vmatpush3.bf16.msra.mxu0 %v1771_v31 }
 0x368   :  { %1773 = vmatprep.subr.bf16.mxu0 %v2017_v0 }
 0x369   :  { %1796 = vmatpush3.bf16.msra.mxu1 %v1795_v55 }
 0x36a   :  { %1797 = vmatprep.subr.bf16.mxu1 %v2017_v0  ;;  %v1264_v0 = vld [vmem:[%s2289_s8] ss:$0 sm:$0xff] }
 0x36b   :  { %1775 = vmatpush3.bf16.msra.mxu0 %v1774_v35 }
 0x36d   :  { %1799 = vmatpush3.bf16.msra.mxu1 %v1798_v8 }
 0x421   :  { %v1307_v56 = vpop.f32.mrb[4].mxu0 }
 0x422   :  { %v1308_v58 = vpop.f32.mrb[5].mxu0  ;;  %v1342_v59 = vpop.f32.mrb[4].mxu1 }
 0x423   :  { %v1309_v60 = vadd.f32 %v1308_v58, %v1307_v56  ;;  %v1343_v62 = vpop.f32.mrb[5].mxu1 }
 0x424   :  { %v1344_v63 = vadd.f32 %v1343_v62, %v1342_v59 }
 0x425   :  { %v981_v2 = vadd.f32 %v1309_v60, %v1263_v57 }
 0x427   :  { %v1051_v3 = vadd.f32 %v1344_v63, %v981_v2 }
 0x429   :  { %v1054_v5 = vmax.f32 %v1051_v3, 0.0 }
 0x42b   :  { %1431 = vmatmul.mubr.f32.vlgmr.msra.gmra.mrb[6].mxu0 %v1054_v5 }
 0x4fe   :  { %v1144_v12 = vpop.f32.mrb[6].mxu0 }
 0x4ff   :  { %v1145_v13 = vadd.f32 %v1264_v0, %v1144_v12  ;;  %v1432_v10 = vpop.f32.mrb[7].mxu0 }
 0x501   :  { %v1148_v14 = vmax.f32 %v1145_v13, 0.0 }
 0x503   :  { %1466 = vmatmul.mubr.f32.vlgmr.msra.gmra.mrb[6].mxu1 %v1148_v14 }
 0x5d6   :  { %v1238_v11 = vpop.f32.mrb[6].mxu1 }
 0x5d7   :  { %v1239_v22 = vadd.f32 %v1265_v15, %v1238_v11  ;;  %v1467_v16 = vpop.f32.mrb[7].mxu1 }
 0x5d9   :  { %1242 = vst [vmem:[#allocation13] sm:$0xff] %v1239_v22 }
 0x5da   :  { %1984 = shalt.err (!%p1981_p10)
}
 0x5db   :  { %s1985_s28 = scalar_lea.hbm %s2292_s11, 128 }
 0x5dc   :  { %p1986_p11 = scmp.ne.s32.totalorder %s2292_s11, %s1985_s28  ;;  %p1989_p12 = scmp.lt.u32.totalorder %s1985_s28, %s2292_s11 }
 0x5de   :  { %p1991_p13 = pnand %p1989_p12, %p1986_p11 }
 0x5e0   :  { %1994 = shalt.err (!%p1991_p13)
}
 0x5e1   :  { %1252 = dma.vmem_to_hbm [thread:$0]  %s1250_s22, 128, %s2292_s11, [#allocation4]  }
 0x5e2   :  { %2003 = dma.done.wait [#allocation4], 128  }
 0x5e3   :  { %2004 = vsyncadd [#allocation4], 4294967168 }
 0x5e4   :  { %1256 = vsyncpa [#allocation3], 1 }
 0x5e5   :  { %1257 = vsyncpa [#allocation6], 1 }
 0x5e6   :  { %1258 = vsyncpa [#allocation9], 1 }
 0x5e7   :  { %1259 = vsyncpa [#allocation12], 1 }
 0x5e8   :  { %1260 = vsyncpa [#allocation4], 1 }

</bundles_post_ra>
